<compile_context>
chip_gen: v7x
topology: tpu7x:2x2x1
jax: 0.10.0
libtpu: 0.0.40
codegen_flags: <defaults>
</compile_context>

<pallas_src>
import math
from functools import partial

import numpy as np
import jax
import jax.numpy as jnp
from jax import lax
from jax.experimental import pallas as pl
from jax.experimental.pallas import tpu as pltpu

LANE = 128
_VMEM = pl.BlockSpec(memory_space=pltpu.MemorySpace.VMEM)
_SMEM = pl.BlockSpec(memory_space=pltpu.MemorySpace.SMEM)


def _round_up(x, m):
    return (x + m - 1) // m * m


def _pad2(a, rows, cols):
    r, c = a.shape
    return jnp.zeros((rows, cols), a.dtype).at[:r, :c].set(a)


# ----------------------------- Pallas kernels ------------------------------ #

def _gat_layer_kernel(dst_ref, hrep_ref, eattr_ref, mask_ref,
                      w_lin_ref, b_lin_ref, w_edge_ref, b_edge_ref,
                      att_i_ref, att_j_ref, bias_ref,
                      o_ref,
                      xlin_s, xj_s, alp_s,
                      *, heads, d, n_pad, max_deg, apply_relu):
    """One fused GATConv layer: weight_linear + edge_encoder + attention logits
    + segment softmax + 'add' aggregation + head-mean + bias + 1e-6 (+ ReLU)."""
    # 1) weight_linear on the MXU (bf16 operands, f32 accumulation).
    xlin_s[...] = (jnp.dot(hrep_ref[...].astype(jnp.bfloat16), w_lin_ref[...],
                           preferred_element_type=jnp.float32) + b_lin_ref[...])

    # 2) gather x_j = xlin[dst]: hazard-free (pure copy) unrolled loop, every
    #    access a full-width lane-dense (1, 128) row (no RMW chain).
    unroll = True if n_pad <= 64 else 8
    for k in range(max_deg):                               # static, slot-major
        base = k * n_pad

        def gather_k(n, carry, k=k, base=base):
            xj_s[k, pl.ds(n, 1), :] = xlin_s[pl.ds(dst_ref[base + n], 1), :]
            return carry

        lax.fori_loop(0, n_pad, gather_k, 0, unroll=unroll)

    # 3) edge_encoder as 4 rank-1 VPU FMAs (edge_attr kept at width 4, no
    #    zero-padded K=128 matmul), added straight into x_j; head-replicated
    #    attention logits via the otherwise-idle MXU (f32 operands).
    xlin = xlin_s[...]
    li = jnp.dot(xlin, att_i_ref[...], preferred_element_type=jnp.float32)
    for k in range(max_deg):
        eemb_k = b_edge_ref[...]
        for f in range(4):
            eemb_k = eemb_k + eattr_ref[k, :, f:f + 1] * w_edge_ref[f:f + 1, :]
        xjk = xj_s[k] + eemb_k
        xj_s[k] = xjk
        alp_s[k] = li + jnp.dot(xjk, att_j_ref[...],
                                preferred_element_type=jnp.float32)

    # 4) segment softmax, fully vectorized (reductions over the slot axis).
    alpha = alp_s[...]
    alpha = jnp.where(alpha >= 0.0, alpha, 0.2 * alpha)    # leaky_relu(0.2)
    m = jnp.max(alpha, axis=0, keepdims=True)              # per-segment max
    p = jnp.exp(alpha - m) * mask_ref[...]                 # invalid slots -> 0
    denom = jnp.sum(p, axis=0)                             # (N,128), head-replicated
    inv = pl.reciprocal(jnp.where(denom > 0.0, denom, 1.0), approx=True)

    # 5) messages + 'add' aggregation (no scatter): acc[n] = sum_k x_j*p / denom
    acc = jnp.sum(xj_s[...] * p, axis=0) * inv             # (N, 128) f32

    # 6) update(): mean over heads + bias + 1e-6 (+ ReLU); padding lanes -> 0.
    mean = acc[:, 0:d]
    for h in range(1, heads):
        mean = mean + acc[:, h * d:(h + 1) * d]
    out = mean * (1.0 / heads) + bias_ref[:, 0:d] + 1e-6
    if apply_relu:
        out = jnp.maximum(out, 0.0)
    o_ref[...] = jnp.zeros_like(o_ref)
    o_ref[:, 0:d] = out.astype(o_ref.dtype)


def gat_layer(dst_flat, hrep, eattr, mask, lp, *, heads, d, n_pad, max_deg,
              apply_relu, out_dtype):
    e_dense = max_deg * n_pad
    kernel = partial(_gat_layer_kernel, heads=heads, d=d, n_pad=n_pad,
                     max_deg=max_deg, apply_relu=apply_relu)
    flops = int(2 * n_pad * LANE * LANE * (2 + max_deg) + 16 * e_dense * LANE)
    bytes_acc = int(4 * n_pad * LANE + 4 * e_dense * 5
                    + 2 * LANE * LANE + 2 * 4 * LANE * LANE)
    return pl.pallas_call(
        kernel,
        out_shape=jax.ShapeDtypeStruct((n_pad, LANE), out_dtype),
        in_specs=[_SMEM] + [_VMEM] * 10,
        out_specs=_VMEM,
        scratch_shapes=[
            pltpu.VMEM((n_pad, LANE), jnp.float32),             # xlin
            pltpu.VMEM((max_deg, n_pad, LANE), jnp.float32),    # gathered x_j (+eemb)
            pltpu.VMEM((max_deg, n_pad, LANE), jnp.float32),    # attention logits
        ],
        compiler_params=pltpu.CompilerParams(vmem_limit_bytes=48 * 1024 * 1024),
        cost_estimate=pl.CostEstimate(flops=flops,
                                      transcendentals=int(e_dense * LANE),
                                      bytes_accessed=bytes_acc),
    )(dst_flat, hrep, eattr, mask, lp["w_lin"], lp["b_lin"], lp["w_edge"],
      lp["b_edge"], lp["att_i"], lp["att_j"], lp["bias"])


def _graph_pred_kernel(gstart_ref, gcount_ref, center_ref, invcnt_ref,
                       nr_ref, w_ref, b_ref, o_ref, rep_s,
                       *, n_graphs, max_win):
    """global_mean_pool over contiguous per-graph row windows + center-node
    gather + graph_pred_linear fused into one K=256 MXU contraction."""
    row = lax.broadcasted_iota(jnp.int32, (max_win, 1), 0)
    for g in range(n_graphs):                               # static, G is tiny
        win = nr_ref[pl.ds(gstart_ref[g], max_win), :].astype(jnp.float32)
        valid = (row < gcount_ref[g]).astype(jnp.float32)
        pooled = jnp.sum(win * valid, axis=0, keepdims=True) * invcnt_ref[g]
        center = nr_ref[pl.ds(center_ref[g], 1), :].astype(jnp.float32)
        rep_s[g:g + 1, 0:LANE] = pooled
        rep_s[g:g + 1, LANE:2 * LANE] = center
    # cat([pooled, center], 1) @ W + b as a single 256-deep contraction
    o_ref[...] = (jnp.dot(rep_s[...].astype(jnp.bfloat16), w_ref[...],
                          preferred_element_type=jnp.float32) + b_ref[...])


def graph_pred(gstart, gcount, center_idx, invcnt, node_rep, w_cat, b_pred,
               *, max_win):
    n_rows = node_rep.shape[0]
    g = int(gstart.shape[0])
    kernel = partial(_graph_pred_kernel, n_graphs=g, max_win=max_win)
    return pl.pallas_call(
        kernel,
        out_shape=jax.ShapeDtypeStruct((g, LANE), jnp.float32),
        in_specs=[_SMEM] * 4 + [_VMEM] * 3,
        out_specs=_VMEM,
        scratch_shapes=[pltpu.VMEM((g, 2 * LANE), jnp.float32)],
        compiler_params=pltpu.CompilerParams(vmem_limit_bytes=48 * 1024 * 1024),
        cost_estimate=pl.CostEstimate(
            flops=int(2 * g * 2 * LANE * LANE + 2 * n_rows * LANE),
            transcendentals=0,
            bytes_accessed=int(4 * n_rows * LANE + 2 * 2 * LANE * LANE
                               + 4 * g * LANE)),
    )(gstart, gcount, center_idx, invcnt, node_rep, w_cat, b_pred)


# ---------------------------- host-side glue -------------------------------- #

def init_raw_params(key, num_layer, emb_dim, heads, num_tasks):
    d, h = emb_dim, heads
    keys = jax.random.split(key, num_layer + 2)
    layers = []
    for l in range(num_layer):
        k = jax.random.split(keys[l], 4)
        lp = {
            "w_lin": jax.random.normal(k[0], (d, h * d), jnp.float32) / math.sqrt(d),
            "b_lin": jnp.zeros((1, h * d), jnp.float32),
            "w_edge": jax.random.normal(k[1], (4, h * d), jnp.float32) / math.sqrt(4.0),
            "b_edge": jnp.zeros((1, h * d), jnp.float32),
            "att": jax.random.normal(k[2], (h, 2 * d), jnp.float32) / math.sqrt(2 * d),
            "bias": jnp.zeros((1, d), jnp.float32),        # zeros() init in reference
        }
        if l == 0:
            lp["node_emb"] = jax.random.normal(k[3], (2, d), jnp.float32) / math.sqrt(d)
        layers.append(lp)
    w_pred = jax.random.normal(keys[-2], (2 * d, num_tasks), jnp.float32) / math.sqrt(2 * d)
    b_pred = jnp.zeros((1, num_tasks), jnp.float32)
    return {"gnn": layers, "w_pred": w_pred, "b_pred": b_pred}


def pack_gat_params(raw, d, heads):
    """Lane-dense, padded kernel operands.  Head h occupies lanes [h*d,(h+1)*d)
    of ONE 128-lane block.  att_i/att_j are 'head-expanded' (128,128) matrices:
    xlin @ att_* yields the per-head attention logit replicated across that
    head's d lanes (one MXU op; per-head alpha broadcast comes for free)."""
    att_np = np.asarray(jax.device_get(raw["att"]))          # (heads, 2d)
    att_i = np.zeros((LANE, LANE), np.float32)
    att_j = np.zeros((LANE, LANE), np.float32)
    for h in range(heads):
        att_i[h * d:(h + 1) * d, h * d:(h + 1) * d] = \
            np.broadcast_to(att_np[h, :d][:, None], (d, d))
        att_j[h * d:(h + 1) * d, h * d:(h + 1) * d] = \
            np.broadcast_to(att_np[h, d:][:, None], (d, d))
    return {
        "w_lin": _pad2(raw["w_lin"], LANE, LANE).astype(jnp.bfloat16),
        "b_lin": _pad2(raw["b_lin"], 1, LANE),
        "w_edge": _pad2(raw["w_edge"], 4, LANE),             # f32, applied as VPU FMAs
        "b_edge": _pad2(raw["b_edge"], 1, LANE),
        "att_i": jnp.asarray(att_i),
        "att_j": jnp.asarray(att_j),
        "bias": _pad2(raw["bias"], 1, LANE),
    }


def gnn_graphpred_forward(raw_params, data, num_layer, emb_dim, heads,
                          num_tasks, num_graphs):
    # NOTE: graph preprocessing below is host-side glue on concrete inputs
    # (data-dependent layout), not meant to run under jit.
    d = emb_dim
    assert heads * d <= LANE, "heads*emb_dim must fit one 128-lane block"

    x_np = np.asarray(jax.device_get(data["x"])).reshape(-1)
    ei_np = np.asarray(jax.device_get(data["edge_index"]))
    ea_np = np.asarray(jax.device_get(data["edge_attr"])).astype(np.float32)
    batch_np = np.asarray(jax.device_get(data["batch"]))
    center_np = np.asarray(jax.device_get(data["center_node_idx"])).astype(np.int32)
    n = int(x_np.shape[0])

    # graph segment offsets (batch is sorted / contiguous per graph)
    assert np.all(np.diff(batch_np) >= 0), "batch must be sorted per graph"
    gcount = np.bincount(batch_np, minlength=num_graphs).astype(np.int32)
    gstart = np.concatenate([[0], np.cumsum(gcount)[:-1]]).astype(np.int32)
    max_win = _round_up(max(int(gcount.max()), 1), 8)
    n_pad = _round_up(max(n, int((gstart + max_win).max()), 8), 8)

    # add_self_loops + self-loop edge_attr (zeros with column 1 set to 1)
    loops = np.arange(n, dtype=np.int64)
    src = np.concatenate([ei_np[0].astype(np.int64), loops])
    dst = np.concatenate([ei_np[1].astype(np.int64), loops])
    sl_attr = np.zeros((n, 4), np.float32)
    sl_attr[:, 1] = 1.0
    ea_all = np.concatenate([ea_np, sl_attr], axis=0)

    # dense slot-major edge layout (softmax group / aggregation target = src):
    # slot k of node s holds its k-th outgoing edge; invalid slots are masked.
    deg = np.bincount(src, minlength=n)
    max_deg = int(deg.max())
    dst_dense = np.tile(np.arange(n_pad, dtype=np.int32)[None, :], (max_deg, 1))
    eattr_dense = np.zeros((max_deg, n_pad, 4), np.float32)
    slot_mask = np.zeros((max_deg, n_pad, 1), np.float32)
    cursor = np.zeros(n, np.int32)
    for e in range(src.shape[0]):
        s, t = int(src[e]), int(dst[e])
        k = int(cursor[s]); cursor[s] += 1
        dst_dense[k, s] = t
        eattr_dense[k, s, :] = ea_all[e]
        slot_mask[k, s, 0] = 1.0

    dst_flat = jnp.asarray(dst_dense.reshape(-1), jnp.int32)
    eattr_j = jnp.asarray(eattr_dense)
    mask_j = jnp.asarray(slot_mask)

    # input-layer Embedding lookup (host glue, as in the reference module)
    emb0 = raw_params["gnn"][0]["node_emb"]
    x_pad = jnp.zeros((n_pad,), jnp.int32).at[:n].set(jnp.asarray(x_np, jnp.int32))
    hrep = (jnp.zeros((n_pad, LANE), jnp.float32)
            .at[:, :d].set(emb0[x_pad]).astype(jnp.bfloat16))

    for layer in range(num_layer):
        lp = pack_gat_params(raw_params["gnn"][layer], d, heads)
        last = layer == num_layer - 1
        hrep = gat_layer(dst_flat, hrep, eattr_j, mask_j, lp,
                         heads=heads, d=d, n_pad=n_pad, max_deg=max_deg,
                         apply_relu=not last,
                         out_dtype=jnp.float32 if last else jnp.bfloat16)
        # F.dropout with drop_ratio=0 -> identity

    node_rep = hrep                 # JK='last'; real features in columns [:d]

    invcnt = jnp.asarray((1.0 / np.maximum(gcount, 1)).astype(np.float32))

    # cat([pooled, center], 1) @ W_pred folded into one K=256 contraction
    w_pred = raw_params["w_pred"]
    w_cat = jnp.zeros((2 * LANE, LANE), jnp.float32)
    w_cat = w_cat.at[:d, :num_tasks].set(w_pred[:d])
    w_cat = w_cat.at[LANE:LANE + d, :num_tasks].set(w_pred[d:])
    w_cat = w_cat.astype(jnp.bfloat16)
    b_pred = _pad2(raw_params["b_pred"], 1, LANE)

    out = graph_pred(jnp.asarray(gstart), jnp.asarray(gcount),
                     jnp.asarray(center_np), invcnt, node_rep, w_cat, b_pred,
                     max_win=max_win)
    return out[:, :num_tasks]


# ------------------------- pure-JAX reference check ------------------------- #

def reference_forward(raw_params, data, num_layer, emb_dim, heads,
                      num_tasks, num_graphs):
    x_int, edge_index = data["x"], data["edge_index"]
    edge_attr, batch, center_idx = data["edge_attr"], data["batch"], data["center_node_idx"]
    n, d = x_int.shape[0], emb_dim
    loops = jnp.arange(n, dtype=edge_index.dtype)
    ei = jnp.concatenate([edge_index, jnp.stack([loops, loops])], axis=1)
    sl = jnp.zeros((n, 4), jnp.float32).at[:, 1].set(1.0)
    ea = jnp.concatenate([edge_attr.astype(jnp.float32), sl], axis=0)
    src, dst = ei[0], ei[1]
    e = ea.shape[0]

    def mm(a, b):
        return jnp.dot(a.astype(jnp.bfloat16), b.astype(jnp.bfloat16),
                       preferred_element_type=jnp.float32)

    h = None
    for layer in range(num_layer):
        lp = raw_params["gnn"][layer]
        if layer == 0:
            h = lp["node_emb"][x_int.reshape(-1)]
        xlin = (mm(h, lp["w_lin"]) + lp["b_lin"]).reshape(n, heads, d)
        eemb = (jnp.dot(ea, lp["w_edge"]) + lp["b_edge"]).reshape(e, heads, d)
        x_i = xlin[src]
        x_j = xlin[dst] + eemb
        att = lp["att"]
        alpha = (x_i * att[None, :, :d]).sum(-1) + (x_j * att[None, :, d:]).sum(-1)
        alpha = jnp.where(alpha >= 0.0, alpha, 0.2 * alpha)
        alpha = alpha - jnp.max(alpha)
        expa = jnp.exp(alpha)
        denom = jax.ops.segment_sum(expa, src, num_segments=n)[src]
        msg = x_j * (expa / denom)[:, :, None]
        aggr = jax.ops.segment_sum(msg.reshape(e, heads * d), src, num_segments=n)
        h = aggr.reshape(n, heads, d).mean(axis=1) + lp["bias"] + 1e-6
        if layer != num_layer - 1:
            h = jax.nn.relu(h)
    counts = jnp.zeros((num_graphs,), jnp.float32).at[batch].add(1.0)
    pooled = (jax.ops.segment_sum(h, batch, num_segments=num_graphs)
              / jnp.maximum(counts, 1.0)[:, None])
    graph_rep = jnp.concatenate([pooled, h[center_idx]], axis=1)
    return mm(graph_rep, raw_params["w_pred"]) + raw_params["b_pred"]


# --------------------------------- main ------------------------------------ #

if __name__ == "__main__":
    num_layer, emb_dim, heads, num_tasks = 2, 32, 2, 8
    num_graphs, nodes_per_graph = 2, 4
    n_nodes = num_graphs * nodes_per_graph

    key = jax.random.PRNGKey(0)
    k_param, k_x, k_e = jax.random.split(key, 3)
    raw_params = init_raw_params(k_param, num_layer, emb_dim, heads, num_tasks)

    # two 4-node path graphs with bidirectional edges
    ei_single = jnp.array([[0, 1, 1, 2, 2, 3],
                           [1, 0, 2, 1, 3, 2]], dtype=jnp.int32)
    edge_index = jnp.concatenate([ei_single, ei_single + nodes_per_graph], axis=1)
    n_edges = edge_index.shape[1]

    data = {
        "x": jax.random.randint(k_x, (n_nodes, 1), 0, 2, dtype=jnp.int32),
        "edge_index": edge_index,
        "edge_attr": jax.random.uniform(k_e, (n_edges, 4), jnp.float32),
        "batch": jnp.array([0, 0, 0, 0, 1, 1, 1, 1], dtype=jnp.int32),
        "center_node_idx": jnp.array([0, 4], dtype=jnp.int32),
    }

    out = gnn_graphpred_forward(raw_params, data, num_layer, emb_dim, heads,
                                num_tasks, num_graphs)
    jax.block_until_ready(out)
    ref = reference_forward(raw_params, data, num_layer, emb_dim, heads,
                            num_tasks, num_graphs)

    assert out.shape == (num_graphs, num_tasks)
    assert bool(jnp.all(jnp.isfinite(out)))
    assert bool(jnp.allclose(out, ref, rtol=5e-2, atol=5e-3)), (
        f"max abs diff {float(jnp.max(jnp.abs(out - ref)))}")
    print("KERNEL_OK")
</pallas_src>

<mosaic_0001>
module attributes {stable_mosaic.version = 11 : i64} {
  func.func @_gat_layer_kernel(%arg0: memref<48xi32, #tpu.memory_space<smem>>, %arg1: memref<16x128xbf16, #tpu.memory_space<vmem>>, %arg2: memref<3x16x4xf32, #tpu.memory_space<vmem>>, %arg3: memref<3x16x1xf32, #tpu.memory_space<vmem>>, %arg4: memref<128x128xbf16, #tpu.memory_space<vmem>>, %arg5: memref<1x128xf32, #tpu.memory_space<vmem>>, %arg6: memref<4x128xf32, #tpu.memory_space<vmem>>, %arg7: memref<1x128xf32, #tpu.memory_space<vmem>>, %arg8: memref<128x128xf32, #tpu.memory_space<vmem>>, %arg9: memref<128x128xf32, #tpu.memory_space<vmem>>, %arg10: memref<1x128xf32, #tpu.memory_space<vmem>>, %arg11: memref<16x128xbf16, #tpu.memory_space<vmem>>, %arg12: memref<16x128xf32, #tpu.memory_space<vmem>>, %arg13: memref<3x16x128xf32, #tpu.memory_space<vmem>>, %arg14: memref<3x16x128xf32, #tpu.memory_space<vmem>>) attributes {dimension_semantics = [], scalar_prefetch = 0 : i64, scratch_operands = 3 : i64, tpu.core_type = #tpu.core_type<tc>} {
    %c0 = arith.constant 0 : index
    %c0_0 = arith.constant 0 : index
    %0 = vector.load %arg1[%c0, %c0_0] : memref<16x128xbf16, #tpu.memory_space<vmem>>, vector<16x128xbf16>
    %c0_1 = arith.constant 0 : index
    %c0_2 = arith.constant 0 : index
    %1 = vector.load %arg4[%c0_1, %c0_2] : memref<128x128xbf16, #tpu.memory_space<vmem>>, vector<128x128xbf16>
    %cst = arith.constant dense<0.000000e+00> : vector<16x128xf32>
    %2 = tpu.matmul %0, %1, %cst {dimension_numbers = #tpu.dot_dimension_numbers<[1], [0], [0], [1], [0, 0, 1, 1], [], []>} : vector<16x128xbf16>, vector<128x128xbf16>, vector<16x128xf32> -> vector<16x128xf32>
    %c0_3 = arith.constant 0 : index
    %c0_4 = arith.constant 0 : index
    %3 = vector.load %arg5[%c0_3, %c0_4] : memref<1x128xf32, #tpu.memory_space<vmem>>, vector<1x128xf32>
    %4 = vector.broadcast %3 : vector<1x128xf32> to vector<16x128xf32>
    %5 = arith.addf %2, %4 : vector<16x128xf32>
    %c0_5 = arith.constant 0 : index
    %c0_6 = arith.constant 0 : index
    %6 = vector.load %arg12[%c0_5, %c0_6] : memref<16x128xf32, #tpu.memory_space<vmem>>, vector<16x128xf32>
    tpu.vector_store %arg12[%c0_5, %c0_6], %5 {strides = array<i32>} : memref<16x128xf32, #tpu.memory_space<vmem>>, vector<16x128xf32>,
    %c0_i32 = arith.constant 0 : i32
    %c0_i32_7 = arith.constant 0 : i32
    %7 = arith.addi %c0_i32_7, %c0_i32 : i32
    %8 = arith.index_cast %7 : i32 to index
    %9 = memref.load %arg0[%8] : memref<48xi32, #tpu.memory_space<smem>>
    %10 = arith.index_cast %9 : i32 to index
    %c0_8 = arith.constant 0 : index
    %11 = vector.load %arg12[%10, %c0_8] : memref<16x128xf32, #tpu.memory_space<vmem>>, vector<1x128xf32>
    %c0_9 = arith.constant 0 : index
    %12 = arith.index_cast %c0_i32 : i32 to index
    %c0_10 = arith.constant 0 : index
    %13 = vector.load %arg13[%c0_9, %12, %c0_10] : memref<3x16x128xf32, #tpu.memory_space<vmem>>, vector<1x1x128xf32>
    %14 = vector.shape_cast %13 : vector<1x1x128xf32> to vector<1x128xf32>
    %15 = vector.shape_cast %11 : vector<1x128xf32> to vector<1x1x128xf32>
    tpu.vector_store %arg13[%c0_9, %12, %c0_10], %15 {strides = array<i32>} : memref<3x16x128xf32, #tpu.memory_space<vmem>>, vector<1x1x128xf32>,
    %c1_i32 = arith.constant 1 : i32
    %c0_i32_11 = arith.constant 0 : i32
    %16 = arith.addi %c0_i32_11, %c1_i32 : i32
    %17 = arith.index_cast %16 : i32 to index
    %18 = memref.load %arg0[%17] : memref<48xi32, #tpu.memory_space<smem>>
    %19 = arith.index_cast %18 : i32 to index
    %c0_12 = arith.constant 0 : index
    %20 = vector.load %arg12[%19, %c0_12] : memref<16x128xf32, #tpu.memory_space<vmem>>, vector<1x128xf32>
    %c0_13 = arith.constant 0 : index
    %21 = arith.index_cast %c1_i32 : i32 to index
    %c0_14 = arith.constant 0 : index
    %22 = vector.load %arg13[%c0_13, %21, %c0_14] : memref<3x16x128xf32, #tpu.memory_space<vmem>>, vector<1x1x128xf32>
    %23 = vector.shape_cast %22 : vector<1x1x128xf32> to vector<1x128xf32>
    %24 = vector.shape_cast %20 : vector<1x128xf32> to vector<1x1x128xf32>
    tpu.vector_store %arg13[%c0_13, %21, %c0_14], %24 {strides = array<i32>} : memref<3x16x128xf32, #tpu.memory_space<vmem>>, vector<1x1x128xf32>,
    %c2_i32 = arith.constant 2 : i32
    %c0_i32_15 = arith.constant 0 : i32
    %25 = arith.addi %c0_i32_15, %c2_i32 : i32
    %26 = arith.index_cast %25 : i32 to index
    %27 = memref.load %arg0[%26] : memref<48xi32, #tpu.memory_space<smem>>
    %28 = arith.index_cast %27 : i32 to index
    %c0_16 = arith.constant 0 : index
    %29 = vector.load %arg12[%28, %c0_16] : memref<16x128xf32, #tpu.memory_space<vmem>>, vector<1x128xf32>
    %c0_17 = arith.constant 0 : index
    %30 = arith.index_cast %c2_i32 : i32 to index
    %c0_18 = arith.constant 0 : index
    %31 = vector.load %arg13[%c0_17, %30, %c0_18] : memref<3x16x128xf32, #tpu.memory_space<vmem>>, vector<1x1x128xf32>
    %32 = vector.shape_cast %31 : vector<1x1x128xf32> to vector<1x128xf32>
    %33 = vector.shape_cast %29 : vector<1x128xf32> to vector<1x1x128xf32>
    tpu.vector_store %arg13[%c0_17, %30, %c0_18], %33 {strides = array<i32>} : memref<3x16x128xf32, #tpu.memory_space<vmem>>, vector<1x1x128xf32>,
    %c3_i32 = arith.constant 3 : i32
    %c0_i32_19 = arith.constant 0 : i32
    %34 = arith.addi %c0_i32_19, %c3_i32 : i32
    %35 = arith.index_cast %34 : i32 to index
    %36 = memref.load %arg0[%35] : memref<48xi32, #tpu.memory_space<smem>>
    %37 = arith.index_cast %36 : i32 to index
    %c0_20 = arith.constant 0 : index
    %38 = vector.load %arg12[%37, %c0_20] : memref<16x128xf32, #tpu.memory_space<vmem>>, vector<1x128xf32>
    %c0_21 = arith.constant 0 : index
    %39 = arith.index_cast %c3_i32 : i32 to index
    %c0_22 = arith.constant 0 : index
    %40 = vector.load %arg13[%c0_21, %39, %c0_22] : memref<3x16x128xf32, #tpu.memory_space<vmem>>, vector<1x1x128xf32>
    %41 = vector.shape_cast %40 : vector<1x1x128xf32> to vector<1x128xf32>
    %42 = vector.shape_cast %38 : vector<1x128xf32> to vector<1x1x128xf32>
    tpu.vector_store %arg13[%c0_21, %39, %c0_22], %42 {strides = array<i32>} : memref<3x16x128xf32, #tpu.memory_space<vmem>>, vector<1x1x128xf32>,
    %c4_i32 = arith.constant 4 : i32
    %c0_i32_23 = arith.constant 0 : i32
    %43 = arith.addi %c0_i32_23, %c4_i32 : i32
    %44 = arith.index_cast %43 : i32 to index
    %45 = memref.load %arg0[%44] : memref<48xi32, #tpu.memory_space<smem>>
    %46 = arith.index_cast %45 : i32 to index
    %c0_24 = arith.constant 0 : index
    %47 = vector.load %arg12[%46, %c0_24] : memref<16x128xf32, #tpu.memory_space<vmem>>, vector<1x128xf32>
    %c0_25 = arith.constant 0 : index
    %48 = arith.index_cast %c4_i32 : i32 to index
    %c0_26 = arith.constant 0 : index
    %49 = vector.load %arg13[%c0_25, %48, %c0_26] : memref<3x16x128xf32, #tpu.memory_space<vmem>>, vector<1x1x128xf32>
    %50 = vector.shape_cast %49 : vector<1x1x128xf32> to vector<1x128xf32>
    %51 = vector.shape_cast %47 : vector<1x128xf32> to vector<1x1x128xf32>
    tpu.vector_store %arg13[%c0_25, %48, %c0_26], %51 {strides = array<i32>} : memref<3x16x128xf32, #tpu.memory_space<vmem>>, vector<1x1x128xf32>,
    %c5_i32 = arith.constant 5 : i32
    %c0_i32_27 = arith.constant 0 : i32
    %52 = arith.addi %c0_i32_27, %c5_i32 : i32
    %53 = arith.index_cast %52 : i32 to index
    %54 = memref.load %arg0[%53] : memref<48xi32, #tpu.memory_space<smem>>
    %55 = arith.index_cast %54 : i32 to index
    %c0_28 = arith.constant 0 : index
    %56 = vector.load %arg12[%55, %c0_28] : memref<16x128xf32, #tpu.memory_space<vmem>>, vector<1x128xf32>
    %c0_29 = arith.constant 0 : index
    %57 = arith.index_cast %c5_i32 : i32 to index
    %c0_30 = arith.constant 0 : index
    %58 = vector.load %arg13[%c0_29, %57, %c0_30] : memref<3x16x128xf32, #tpu.memory_space<vmem>>, vector<1x1x128xf32>
    %59 = vector.shape_cast %58 : vector<1x1x128xf32> to vector<1x128xf32>
    %60 = vector.shape_cast %56 : vector<1x128xf32> to vector<1x1x128xf32>
    tpu.vector_store %arg13[%c0_29, %57, %c0_30], %60 {strides = array<i32>} : memref<3x16x128xf32, #tpu.memory_space<vmem>>, vector<1x1x128xf32>,
    %c6_i32 = arith.constant 6 : i32
    %c0_i32_31 = arith.constant 0 : i32
    %61 = arith.addi %c0_i32_31, %c6_i32 : i32
    %62 = arith.index_cast %61 : i32 to index
    %63 = memref.load %arg0[%62] : memref<48xi32, #tpu.memory_space<smem>>
    %64 = arith.index_cast %63 : i32 to index
    %c0_32 = arith.constant 0 : index
    %65 = vector.load %arg12[%64, %c0_32] : memref<16x128xf32, #tpu.memory_space<vmem>>, vector<1x128xf32>
    %c0_33 = arith.constant 0 : index
    %66 = arith.index_cast %c6_i32 : i32 to index
    %c0_34 = arith.constant 0 : index
    %67 = vector.load %arg13[%c0_33, %66, %c0_34] : memref<3x16x128xf32, #tpu.memory_space<vmem>>, vector<1x1x128xf32>
    %68 = vector.shape_cast %67 : vector<1x1x128xf32> to vector<1x128xf32>
    %69 = vector.shape_cast %65 : vector<1x128xf32> to vector<1x1x128xf32>
    tpu.vector_store %arg13[%c0_33, %66, %c0_34], %69 {strides = array<i32>} : memref<3x16x128xf32, #tpu.memory_space<vmem>>, vector<1x1x128xf32>,
    %c7_i32 = arith.constant 7 : i32
    %c0_i32_35 = arith.constant 0 : i32
    %70 = arith.addi %c0_i32_35, %c7_i32 : i32
    %71 = arith.index_cast %70 : i32 to index
    %72 = memref.load %arg0[%71] : memref<48xi32, #tpu.memory_space<smem>>
    %73 = arith.index_cast %72 : i32 to index
    %c0_36 = arith.constant 0 : index
    %74 = vector.load %arg12[%73, %c0_36] : memref<16x128xf32, #tpu.memory_space<vmem>>, vector<1x128xf32>
    %c0_37 = arith.constant 0 : index
    %75 = arith.index_cast %c7_i32 : i32 to index
    %c0_38 = arith.constant 0 : index
    %76 = vector.load %arg13[%c0_37, %75, %c0_38] : memref<3x16x128xf32, #tpu.memory_space<vmem>>, vector<1x1x128xf32>
    %77 = vector.shape_cast %76 : vector<1x1x128xf32> to vector<1x128xf32>
    %78 = vector.shape_cast %74 : vector<1x128xf32> to vector<1x1x128xf32>
    tpu.vector_store %arg13[%c0_37, %75, %c0_38], %78 {strides = array<i32>} : memref<3x16x128xf32, #tpu.memory_space<vmem>>, vector<1x1x128xf32>,
    %c8_i32 = arith.constant 8 : i32
    %c0_i32_39 = arith.constant 0 : i32
    %79 = arith.addi %c0_i32_39, %c8_i32 : i32
    %80 = arith.index_cast %79 : i32 to index
    %81 = memref.load %arg0[%80] : memref<48xi32, #tpu.memory_space<smem>>
    %82 = arith.index_cast %81 : i32 to index
    %c0_40 = arith.constant 0 : index
    %83 = vector.load %arg12[%82, %c0_40] : memref<16x128xf32, #tpu.memory_space<vmem>>, vector<1x128xf32>
    %c0_41 = arith.constant 0 : index
    %84 = arith.index_cast %c8_i32 : i32 to index
    %c0_42 = arith.constant 0 : index
    %85 = vector.load %arg13[%c0_41, %84, %c0_42] : memref<3x16x128xf32, #tpu.memory_space<vmem>>, vector<1x1x128xf32>
    %86 = vector.shape_cast %85 : vector<1x1x128xf32> to vector<1x128xf32>
    %87 = vector.shape_cast %83 : vector<1x128xf32> to vector<1x1x128xf32>
    tpu.vector_store %arg13[%c0_41, %84, %c0_42], %87 {strides = array<i32>} : memref<3x16x128xf32, #tpu.memory_space<vmem>>, vector<1x1x128xf32>,
    %c9_i32 = arith.constant 9 : i32
    %c0_i32_43 = arith.constant 0 : i32
    %88 = arith.addi %c0_i32_43, %c9_i32 : i32
    %89 = arith.index_cast %88 : i32 to index
    %90 = memref.load %arg0[%89] : memref<48xi32, #tpu.memory_space<smem>>
    %91 = arith.index_cast %90 : i32 to index
    %c0_44 = arith.constant 0 : index
    %92 = vector.load %arg12[%91, %c0_44] : memref<16x128xf32, #tpu.memory_space<vmem>>, vector<1x128xf32>
    %c0_45 = arith.constant 0 : index
    %93 = arith.index_cast %c9_i32 : i32 to index
    %c0_46 = arith.constant 0 : index
    %94 = vector.load %arg13[%c0_45, %93, %c0_46] : memref<3x16x128xf32, #tpu.memory_space<vmem>>, vector<1x1x128xf32>
    %95 = vector.shape_cast %94 : vector<1x1x128xf32> to vector<1x128xf32>
    %96 = vector.shape_cast %92 : vector<1x128xf32> to vector<1x1x128xf32>
    tpu.vector_store %arg13[%c0_45, %93, %c0_46], %96 {strides = array<i32>} : memref<3x16x128xf32, #tpu.memory_space<vmem>>, vector<1x1x128xf32>,
    %c10_i32 = arith.constant 10 : i32
    %c0_i32_47 = arith.constant 0 : i32
    %97 = arith.addi %c0_i32_47, %c10_i32 : i32
    %98 = arith.index_cast %97 : i32 to index
    %99 = memref.load %arg0[%98] : memref<48xi32, #tpu.memory_space<smem>>
    %100 = arith.index_cast %99 : i32 to index
    %c0_48 = arith.constant 0 : index
    %101 = vector.load %arg12[%100, %c0_48] : memref<16x128xf32, #tpu.memory_space<vmem>>, vector<1x128xf32>
    %c0_49 = arith.constant 0 : index
    %102 = arith.index_cast %c10_i32 : i32 to index
    %c0_50 = arith.constant 0 : index
    %103 = vector.load %arg13[%c0_49, %102, %c0_50] : memref<3x16x128xf32, #tpu.memory_space<vmem>>, vector<1x1x128xf32>
    %104 = vector.shape_cast %103 : vector<1x1x128xf32> to vector<1x128xf32>
    %105 = vector.shape_cast %101 : vector<1x128xf32> to vector<1x1x128xf32>
    tpu.vector_store %arg13[%c0_49, %102, %c0_50], %105 {strides = array<i32>} : memref<3x16x128xf32, #tpu.memory_space<vmem>>, vector<1x1x128xf32>,
    %c11_i32 = arith.constant 11 : i32
    %c0_i32_51 = arith.constant 0 : i32
    %106 = arith.addi %c0_i32_51, %c11_i32 : i32
    %107 = arith.index_cast %106 : i32 to index
    %108 = memref.load %arg0[%107] : memref<48xi32, #tpu.memory_space<smem>>
    %109 = arith.index_cast %108 : i32 to index
    %c0_52 = arith.constant 0 : index
    %110 = vector.load %arg12[%109, %c0_52] : memref<16x128xf32, #tpu.memory_space<vmem>>, vector<1x128xf32>
    %c0_53 = arith.constant 0 : index
    %111 = arith.index_cast %c11_i32 : i32 to index
    %c0_54 = arith.constant 0 : index
    %112 = vector.load %arg13[%c0_53, %111, %c0_54] : memref<3x16x128xf32, #tpu.memory_space<vmem>>, vector<1x1x128xf32>
    %113 = vector.shape_cast %112 : vector<1x1x128xf32> to vector<1x128xf32>
    %114 = vector.shape_cast %110 : vector<1x128xf32> to vector<1x1x128xf32>
    tpu.vector_store %arg13[%c0_53, %111, %c0_54], %114 {strides = array<i32>} : memref<3x16x128xf32, #tpu.memory_space<vmem>>, vector<1x1x128xf32>,
    %c12_i32 = arith.constant 12 : i32
    %c0_i32_55 = arith.constant 0 : i32
    %115 = arith.addi %c0_i32_55, %c12_i32 : i32
    %116 = arith.index_cast %115 : i32 to index
    %117 = memref.load %arg0[%116] : memref<48xi32, #tpu.memory_space<smem>>
    %118 = arith.index_cast %117 : i32 to index
    %c0_56 = arith.constant 0 : index
    %119 = vector.load %arg12[%118, %c0_56] : memref<16x128xf32, #tpu.memory_space<vmem>>, vector<1x128xf32>
    %c0_57 = arith.constant 0 : index
    %120 = arith.index_cast %c12_i32 : i32 to index
    %c0_58 = arith.constant 0 : index
    %121 = vector.load %arg13[%c0_57, %120, %c0_58] : memref<3x16x128xf32, #tpu.memory_space<vmem>>, vector<1x1x128xf32>
    %122 = vector.shape_cast %121 : vector<1x1x128xf32> to vector<1x128xf32>
    %123 = vector.shape_cast %119 : vector<1x128xf32> to vector<1x1x128xf32>
    tpu.vector_store %arg13[%c0_57, %120, %c0_58], %123 {strides = array<i32>} : memref<3x16x128xf32, #tpu.memory_space<vmem>>, vector<1x1x128xf32>,
    %c13_i32 = arith.constant 13 : i32
    %c0_i32_59 = arith.constant 0 : i32
    %124 = arith.addi %c0_i32_59, %c13_i32 : i32
    %125 = arith.index_cast %124 : i32 to index
    %126 = memref.load %arg0[%125] : memref<48xi32, #tpu.memory_space<smem>>
    %127 = arith.index_cast %126 : i32 to index
    %c0_60 = arith.constant 0 : index
    %128 = vector.load %arg12[%127, %c0_60] : memref<16x128xf32, #tpu.memory_space<vmem>>, vector<1x128xf32>
    %c0_61 = arith.constant 0 : index
    %129 = arith.index_cast %c13_i32 : i32 to index
    %c0_62 = arith.constant 0 : index
    %130 = vector.load %arg13[%c0_61, %129, %c0_62] : memref<3x16x128xf32, #tpu.memory_space<vmem>>, vector<1x1x128xf32>
    %131 = vector.shape_cast %130 : vector<1x1x128xf32> to vector<1x128xf32>
    %132 = vector.shape_cast %128 : vector<1x128xf32> to vector<1x1x128xf32>
    tpu.vector_store %arg13[%c0_61, %129, %c0_62], %132 {strides = array<i32>} : memref<3x16x128xf32, #tpu.memory_space<vmem>>, vector<1x1x128xf32>,
    %c14_i32 = arith.constant 14 : i32
    %c0_i32_63 = arith.constant 0 : i32
    %133 = arith.addi %c0_i32_63, %c14_i32 : i32
    %134 = arith.index_cast %133 : i32 to index
    %135 = memref.load %arg0[%134] : memref<48xi32, #tpu.memory_space<smem>>
    %136 = arith.index_cast %135 : i32 to index
    %c0_64 = arith.constant 0 : index
    %137 = vector.load %arg12[%136, %c0_64] : memref<16x128xf32, #tpu.memory_space<vmem>>, vector<1x128xf32>
    %c0_65 = arith.constant 0 : index
    %138 = arith.index_cast %c14_i32 : i32 to index
    %c0_66 = arith.constant 0 : index
    %139 = vector.load %arg13[%c0_65, %138, %c0_66] : memref<3x16x128xf32, #tpu.memory_space<vmem>>, vector<1x1x128xf32>
    %140 = vector.shape_cast %139 : vector<1x1x128xf32> to vector<1x128xf32>
    %141 = vector.shape_cast %137 : vector<1x128xf32> to vector<1x1x128xf32>
    tpu.vector_store %arg13[%c0_65, %138, %c0_66], %141 {strides = array<i32>} : memref<3x16x128xf32, #tpu.memory_space<vmem>>, vector<1x1x128xf32>,
    %c15_i32 = arith.constant 15 : i32
    %c0_i32_67 = arith.constant 0 : i32
    %142 = arith.addi %c0_i32_67, %c15_i32 : i32
    %143 = arith.index_cast %142 : i32 to index
    %144 = memref.load %arg0[%143] : memref<48xi32, #tpu.memory_space<smem>>
    %145 = arith.index_cast %144 : i32 to index
    %c0_68 = arith.constant 0 : index
    %146 = vector.load %arg12[%145, %c0_68] : memref<16x128xf32, #tpu.memory_space<vmem>>, vector<1x128xf32>
    %c0_69 = arith.constant 0 : index
    %147 = arith.index_cast %c15_i32 : i32 to index
    %c0_70 = arith.constant 0 : index
    %148 = vector.load %arg13[%c0_69, %147, %c0_70] : memref<3x16x128xf32, #tpu.memory_space<vmem>>, vector<1x1x128xf32>
    %149 = vector.shape_cast %148 : vector<1x1x128xf32> to vector<1x128xf32>
    %150 = vector.shape_cast %146 : vector<1x128xf32> to vector<1x1x128xf32>
    tpu.vector_store %arg13[%c0_69, %147, %c0_70], %150 {strides = array<i32>} : memref<3x16x128xf32, #tpu.memory_space<vmem>>, vector<1x1x128xf32>,
    %c16_i32 = arith.constant 16 : i32
    %c0_i32_71 = arith.constant 0 : i32
    %c16_i32_72 = arith.constant 16 : i32
    %151 = arith.addi %c16_i32_72, %c0_i32_71 : i32
    %152 = arith.index_cast %151 : i32 to index
    %153 = memref.load %arg0[%152] : memref<48xi32, #tpu.memory_space<smem>>
    %154 = arith.index_cast %153 : i32 to index
    %c0_73 = arith.constant 0 : index
    %155 = vector.load %arg12[%154, %c0_73] : memref<16x128xf32, #tpu.memory_space<vmem>>, vector<1x128xf32>
    %c1 = arith.constant 1 : index
    %156 = arith.index_cast %c0_i32_71 : i32 to index
    %c0_74 = arith.constant 0 : index
    %157 = vector.load %arg13[%c1, %156, %c0_74] : memref<3x16x128xf32, #tpu.memory_space<vmem>>, vector<1x1x128xf32>
    %158 = vector.shape_cast %157 : vector<1x1x128xf32> to vector<1x128xf32>
    %159 = vector.shape_cast %155 : vector<1x128xf32> to vector<1x1x128xf32>
    tpu.vector_store %arg13[%c1, %156, %c0_74], %159 {strides = array<i32>} : memref<3x16x128xf32, #tpu.memory_space<vmem>>, vector<1x1x128xf32>,
    %c1_i32_75 = arith.constant 1 : i32
    %c16_i32_76 = arith.constant 16 : i32
    %160 = arith.addi %c16_i32_76, %c1_i32_75 : i32
    %161 = arith.index_cast %160 : i32 to index
    %162 = memref.load %arg0[%161] : memref<48xi32, #tpu.memory_space<smem>>
    %163 = arith.index_cast %162 : i32 to index
    %c0_77 = arith.constant 0 : index
    %164 = vector.load %arg12[%163, %c0_77] : memref<16x128xf32, #tpu.memory_space<vmem>>, vector<1x128xf32>
    %c1_78 = arith.constant 1 : index
    %165 = arith.index_cast %c1_i32_75 : i32 to index
    %c0_79 = arith.constant 0 : index
    %166 = vector.load %arg13[%c1_78, %165, %c0_79] : memref<3x16x128xf32, #tpu.memory_space<vmem>>, vector<1x1x128xf32>
    %167 = vector.shape_cast %166 : vector<1x1x128xf32> to vector<1x128xf32>
    %168 = vector.shape_cast %164 : vector<1x128xf32> to vector<1x1x128xf32>
    tpu.vector_store %arg13[%c1_78, %165, %c0_79], %168 {strides = array<i32>} : memref<3x16x128xf32, #tpu.memory_space<vmem>>, vector<1x1x128xf32>,
    %c2_i32_80 = arith.constant 2 : i32
    %c16_i32_81 = arith.constant 16 : i32
    %169 = arith.addi %c16_i32_81, %c2_i32_80 : i32
    %170 = arith.index_cast %169 : i32 to index
    %171 = memref.load %arg0[%170] : memref<48xi32, #tpu.memory_space<smem>>
    %172 = arith.index_cast %171 : i32 to index
    %c0_82 = arith.constant 0 : index
    %173 = vector.load %arg12[%172, %c0_82] : memref<16x128xf32, #tpu.memory_space<vmem>>, vector<1x128xf32>
    %c1_83 = arith.constant 1 : index
    %174 = arith.index_cast %c2_i32_80 : i32 to index
    %c0_84 = arith.constant 0 : index
    %175 = vector.load %arg13[%c1_83, %174, %c0_84] : memref<3x16x128xf32, #tpu.memory_space<vmem>>, vector<1x1x128xf32>
    %176 = vector.shape_cast %175 : vector<1x1x128xf32> to vector<1x128xf32>
    %177 = vector.shape_cast %173 : vector<1x128xf32> to vector<1x1x128xf32>
    tpu.vector_store %arg13[%c1_83, %174, %c0_84], %177 {strides = array<i32>} : memref<3x16x128xf32, #tpu.memory_space<vmem>>, vector<1x1x128xf32>,
    %c3_i32_85 = arith.constant 3 : i32
    %c16_i32_86 = arith.constant 16 : i32
    %178 = arith.addi %c16_i32_86, %c3_i32_85 : i32
    %179 = arith.index_cast %178 : i32 to index
    %180 = memref.load %arg0[%179] : memref<48xi32, #tpu.memory_space<smem>>
    %181 = arith.index_cast %180 : i32 to index
    %c0_87 = arith.constant 0 : index
    %182 = vector.load %arg12[%181, %c0_87] : memref<16x128xf32, #tpu.memory_space<vmem>>, vector<1x128xf32>
    %c1_88 = arith.constant 1 : index
    %183 = arith.index_cast %c3_i32_85 : i32 to index
    %c0_89 = arith.constant 0 : index
    %184 = vector.load %arg13[%c1_88, %183, %c0_89] : memref<3x16x128xf32, #tpu.memory_space<vmem>>, vector<1x1x128xf32>
    %185 = vector.shape_cast %184 : vector<1x1x128xf32> to vector<1x128xf32>
    %186 = vector.shape_cast %182 : vector<1x128xf32> to vector<1x1x128xf32>
    tpu.vector_store %arg13[%c1_88, %183, %c0_89], %186 {strides = array<i32>} : memref<3x16x128xf32, #tpu.memory_space<vmem>>, vector<1x1x128xf32>,
    %c4_i32_90 = arith.constant 4 : i32
    %c16_i32_91 = arith.constant 16 : i32
    %187 = arith.addi %c16_i32_91, %c4_i32_90 : i32
    %188 = arith.index_cast %187 : i32 to index
    %189 = memref.load %arg0[%188] : memref<48xi32, #tpu.memory_space<smem>>
    %190 = arith.index_cast %189 : i32 to index
    %c0_92 = arith.constant 0 : index
    %191 = vector.load %arg12[%190, %c0_92] : memref<16x128xf32, #tpu.memory_space<vmem>>, vector<1x128xf32>
    %c1_93 = arith.constant 1 : index
    %192 = arith.index_cast %c4_i32_90 : i32 to index
    %c0_94 = arith.constant 0 : index
    %193 = vector.load %arg13[%c1_93, %192, %c0_94] : memref<3x16x128xf32, #tpu.memory_space<vmem>>, vector<1x1x128xf32>
    %194 = vector.shape_cast %193 : vector<1x1x128xf32> to vector<1x128xf32>
    %195 = vector.shape_cast %191 : vector<1x128xf32> to vector<1x1x128xf32>
    tpu.vector_store %arg13[%c1_93, %192, %c0_94], %195 {strides = array<i32>} : memref<3x16x128xf32, #tpu.memory_space<vmem>>, vector<1x1x128xf32>,
    %c5_i32_95 = arith.constant 5 : i32
    %c16_i32_96 = arith.constant 16 : i32
    %196 = arith.addi %c16_i32_96, %c5_i32_95 : i32
    %197 = arith.index_cast %196 : i32 to index
    %198 = memref.load %arg0[%197] : memref<48xi32, #tpu.memory_space<smem>>
    %199 = arith.index_cast %198 : i32 to index
    %c0_97 = arith.constant 0 : index
    %200 = vector.load %arg12[%199, %c0_97] : memref<16x128xf32, #tpu.memory_space<vmem>>, vector<1x128xf32>
    %c1_98 = arith.constant 1 : index
    %201 = arith.index_cast %c5_i32_95 : i32 to index
    %c0_99 = arith.constant 0 : index
    %202 = vector.load %arg13[%c1_98, %201, %c0_99] : memref<3x16x128xf32, #tpu.memory_space<vmem>>, vector<1x1x128xf32>
    %203 = vector.shape_cast %202 : vector<1x1x128xf32> to vector<1x128xf32>
    %204 = vector.shape_cast %200 : vector<1x128xf32> to vector<1x1x128xf32>
    tpu.vector_store %arg13[%c1_98, %201, %c0_99], %204 {strides = array<i32>} : memref<3x16x128xf32, #tpu.memory_space<vmem>>, vector<1x1x128xf32>,
    %c6_i32_100 = arith.constant 6 : i32
    %c16_i32_101 = arith.constant 16 : i32
    %205 = arith.addi %c16_i32_101, %c6_i32_100 : i32
    %206 = arith.index_cast %205 : i32 to index
    %207 = memref.load %arg0[%206] : memref<48xi32, #tpu.memory_space<smem>>
    %208 = arith.index_cast %207 : i32 to index
    %c0_102 = arith.constant 0 : index
    %209 = vector.load %arg12[%208, %c0_102] : memref<16x128xf32, #tpu.memory_space<vmem>>, vector<1x128xf32>
    %c1_103 = arith.constant 1 : index
    %210 = arith.index_cast %c6_i32_100 : i32 to index
    %c0_104 = arith.constant 0 : index
    %211 = vector.load %arg13[%c1_103, %210, %c0_104] : memref<3x16x128xf32, #tpu.memory_space<vmem>>, vector<1x1x128xf32>
    %212 = vector.shape_cast %211 : vector<1x1x128xf32> to vector<1x128xf32>
    %213 = vector.shape_cast %209 : vector<1x128xf32> to vector<1x1x128xf32>
    tpu.vector_store %arg13[%c1_103, %210, %c0_104], %213 {strides = array<i32>} : memref<3x16x128xf32, #tpu.memory_space<vmem>>, vector<1x1x128xf32>,
    %c7_i32_105 = arith.constant 7 : i32
    %c16_i32_106 = arith.constant 16 : i32
    %214 = arith.addi %c16_i32_106, %c7_i32_105 : i32
    %215 = arith.index_cast %214 : i32 to index
    %216 = memref.load %arg0[%215] : memref<48xi32, #tpu.memory_space<smem>>
    %217 = arith.index_cast %216 : i32 to index
    %c0_107 = arith.constant 0 : index
    %218 = vector.load %arg12[%217, %c0_107] : memref<16x128xf32, #tpu.memory_space<vmem>>, vector<1x128xf32>
    %c1_108 = arith.constant 1 : index
    %219 = arith.index_cast %c7_i32_105 : i32 to index
    %c0_109 = arith.constant 0 : index
    %220 = vector.load %arg13[%c1_108, %219, %c0_109] : memref<3x16x128xf32, #tpu.memory_space<vmem>>, vector<1x1x128xf32>
    %221 = vector.shape_cast %220 : vector<1x1x128xf32> to vector<1x128xf32>
    %222 = vector.shape_cast %218 : vector<1x128xf32> to vector<1x1x128xf32>
    tpu.vector_store %arg13[%c1_108, %219, %c0_109], %222 {strides = array<i32>} : memref<3x16x128xf32, #tpu.memory_space<vmem>>, vector<1x1x128xf32>,
    %c8_i32_110 = arith.constant 8 : i32
    %c16_i32_111 = arith.constant 16 : i32
    %223 = arith.addi %c16_i32_111, %c8_i32_110 : i32
    %224 = arith.index_cast %223 : i32 to index
    %225 = memref.load %arg0[%224] : memref<48xi32, #tpu.memory_space<smem>>
    %226 = arith.index_cast %225 : i32 to index
    %c0_112 = arith.constant 0 : index
    %227 = vector.load %arg12[%226, %c0_112] : memref<16x128xf32, #tpu.memory_space<vmem>>, vector<1x128xf32>
    %c1_113 = arith.constant 1 : index
    %228 = arith.index_cast %c8_i32_110 : i32 to index
    %c0_114 = arith.constant 0 : index
    %229 = vector.load %arg13[%c1_113, %228, %c0_114] : memref<3x16x128xf32, #tpu.memory_space<vmem>>, vector<1x1x128xf32>
    %230 = vector.shape_cast %229 : vector<1x1x128xf32> to vector<1x128xf32>
    %231 = vector.shape_cast %227 : vector<1x128xf32> to vector<1x1x128xf32>
    tpu.vector_store %arg13[%c1_113, %228, %c0_114], %231 {strides = array<i32>} : memref<3x16x128xf32, #tpu.memory_space<vmem>>, vector<1x1x128xf32>,
    %c9_i32_115 = arith.constant 9 : i32
    %c16_i32_116 = arith.constant 16 : i32
    %232 = arith.addi %c16_i32_116, %c9_i32_115 : i32
    %233 = arith.index_cast %232 : i32 to index
    %234 = memref.load %arg0[%233] : memref<48xi32, #tpu.memory_space<smem>>
    %235 = arith.index_cast %234 : i32 to index
    %c0_117 = arith.constant 0 : index
    %236 = vector.load %arg12[%235, %c0_117] : memref<16x128xf32, #tpu.memory_space<vmem>>, vector<1x128xf32>
    %c1_118 = arith.constant 1 : index
    %237 = arith.index_cast %c9_i32_115 : i32 to index
    %c0_119 = arith.constant 0 : index
    %238 = vector.load %arg13[%c1_118, %237, %c0_119] : memref<3x16x128xf32, #tpu.memory_space<vmem>>, vector<1x1x128xf32>
    %239 = vector.shape_cast %238 : vector<1x1x128xf32> to vector<1x128xf32>
    %240 = vector.shape_cast %236 : vector<1x128xf32> to vector<1x1x128xf32>
    tpu.vector_store %arg13[%c1_118, %237, %c0_119], %240 {strides = array<i32>} : memref<3x16x128xf32, #tpu.memory_space<vmem>>, vector<1x1x128xf32>,
    %c10_i32_120 = arith.constant 10 : i32
    %c16_i32_121 = arith.constant 16 : i32
    %241 = arith.addi %c16_i32_121, %c10_i32_120 : i32
    %242 = arith.index_cast %241 : i32 to index
    %243 = memref.load %arg0[%242] : memref<48xi32, #tpu.memory_space<smem>>
    %244 = arith.index_cast %243 : i32 to index
    %c0_122 = arith.constant 0 : index
    %245 = vector.load %arg12[%244, %c0_122] : memref<16x128xf32, #tpu.memory_space<vmem>>, vector<1x128xf32>
    %c1_123 = arith.constant 1 : index
    %246 = arith.index_cast %c10_i32_120 : i32 to index
    %c0_124 = arith.constant 0 : index
    %247 = vector.load %arg13[%c1_123, %246, %c0_124] : memref<3x16x128xf32, #tpu.memory_space<vmem>>, vector<1x1x128xf32>
    %248 = vector.shape_cast %247 : vector<1x1x128xf32> to vector<1x128xf32>
    %249 = vector.shape_cast %245 : vector<1x128xf32> to vector<1x1x128xf32>
    tpu.vector_store %arg13[%c1_123, %246, %c0_124], %249 {strides = array<i32>} : memref<3x16x128xf32, #tpu.memory_space<vmem>>, vector<1x1x128xf32>,
    %c11_i32_125 = arith.constant 11 : i32
    %c16_i32_126 = arith.constant 16 : i32
    %250 = arith.addi %c16_i32_126, %c11_i32_125 : i32
    %251 = arith.index_cast %250 : i32 to index
    %252 = memref.load %arg0[%251] : memref<48xi32, #tpu.memory_space<smem>>
    %253 = arith.index_cast %252 : i32 to index
    %c0_127 = arith.constant 0 : index
    %254 = vector.load %arg12[%253, %c0_127] : memref<16x128xf32, #tpu.memory_space<vmem>>, vector<1x128xf32>
    %c1_128 = arith.constant 1 : index
    %255 = arith.index_cast %c11_i32_125 : i32 to index
    %c0_129 = arith.constant 0 : index
    %256 = vector.load %arg13[%c1_128, %255, %c0_129] : memref<3x16x128xf32, #tpu.memory_space<vmem>>, vector<1x1x128xf32>
    %257 = vector.shape_cast %256 : vector<1x1x128xf32> to vector<1x128xf32>
    %258 = vector.shape_cast %254 : vector<1x128xf32> to vector<1x1x128xf32>
    tpu.vector_store %arg13[%c1_128, %255, %c0_129], %258 {strides = array<i32>} : memref<3x16x128xf32, #tpu.memory_space<vmem>>, vector<1x1x128xf32>,
    %c12_i32_130 = arith.constant 12 : i32
    %c16_i32_131 = arith.constant 16 : i32
    %259 = arith.addi %c16_i32_131, %c12_i32_130 : i32
    %260 = arith.index_cast %259 : i32 to index
    %261 = memref.load %arg0[%260] : memref<48xi32, #tpu.memory_space<smem>>
    %262 = arith.index_cast %261 : i32 to index
    %c0_132 = arith.constant 0 : index
    %263 = vector.load %arg12[%262, %c0_132] : memref<16x128xf32, #tpu.memory_space<vmem>>, vector<1x128xf32>
    %c1_133 = arith.constant 1 : index
    %264 = arith.index_cast %c12_i32_130 : i32 to index
    %c0_134 = arith.constant 0 : index
    %265 = vector.load %arg13[%c1_133, %264, %c0_134] : memref<3x16x128xf32, #tpu.memory_space<vmem>>, vector<1x1x128xf32>
    %266 = vector.shape_cast %265 : vector<1x1x128xf32> to vector<1x128xf32>
    %267 = vector.shape_cast %263 : vector<1x128xf32> to vector<1x1x128xf32>
    tpu.vector_store %arg13[%c1_133, %264, %c0_134], %267 {strides = array<i32>} : memref<3x16x128xf32, #tpu.memory_space<vmem>>, vector<1x1x128xf32>,
    %c13_i32_135 = arith.constant 13 : i32
    %c16_i32_136 = arith.constant 16 : i32
    %268 = arith.addi %c16_i32_136, %c13_i32_135 : i32
    %269 = arith.index_cast %268 : i32 to index
    %270 = memref.load %arg0[%269] : memref<48xi32, #tpu.memory_space<smem>>
    %271 = arith.index_cast %270 : i32 to index
    %c0_137 = arith.constant 0 : index
    %272 = vector.load %arg12[%271, %c0_137] : memref<16x128xf32, #tpu.memory_space<vmem>>, vector<1x128xf32>
    %c1_138 = arith.constant 1 : index
    %273 = arith.index_cast %c13_i32_135 : i32 to index
    %c0_139 = arith.constant 0 : index
    %274 = vector.load %arg13[%c1_138, %273, %c0_139] : memref<3x16x128xf32, #tpu.memory_space<vmem>>, vector<1x1x128xf32>
    %275 = vector.shape_cast %274 : vector<1x1x128xf32> to vector<1x128xf32>
    %276 = vector.shape_cast %272 : vector<1x128xf32> to vector<1x1x128xf32>
    tpu.vector_store %arg13[%c1_138, %273, %c0_139], %276 {strides = array<i32>} : memref<3x16x128xf32, #tpu.memory_space<vmem>>, vector<1x1x128xf32>,
    %c14_i32_140 = arith.constant 14 : i32
    %c16_i32_141 = arith.constant 16 : i32
    %277 = arith.addi %c16_i32_141, %c14_i32_140 : i32
    %278 = arith.index_cast %277 : i32 to index
    %279 = memref.load %arg0[%278] : memref<48xi32, #tpu.memory_space<smem>>
    %280 = arith.index_cast %279 : i32 to index
    %c0_142 = arith.constant 0 : index
    %281 = vector.load %arg12[%280, %c0_142] : memref<16x128xf32, #tpu.memory_space<vmem>>, vector<1x128xf32>
    %c1_143 = arith.constant 1 : index
    %282 = arith.index_cast %c14_i32_140 : i32 to index
    %c0_144 = arith.constant 0 : index
    %283 = vector.load %arg13[%c1_143, %282, %c0_144] : memref<3x16x128xf32, #tpu.memory_space<vmem>>, vector<1x1x128xf32>
    %284 = vector.shape_cast %283 : vector<1x1x128xf32> to vector<1x128xf32>
    %285 = vector.shape_cast %281 : vector<1x128xf32> to vector<1x1x128xf32>
    tpu.vector_store %arg13[%c1_143, %282, %c0_144], %285 {strides = array<i32>} : memref<3x16x128xf32, #tpu.memory_space<vmem>>, vector<1x1x128xf32>,
    %c15_i32_145 = arith.constant 15 : i32
    %c16_i32_146 = arith.constant 16 : i32
    %286 = arith.addi %c16_i32_146, %c15_i32_145 : i32
    %287 = arith.index_cast %286 : i32 to index
    %288 = memref.load %arg0[%287] : memref<48xi32, #tpu.memory_space<smem>>
    %289 = arith.index_cast %288 : i32 to index
    %c0_147 = arith.constant 0 : index
    %290 = vector.load %arg12[%289, %c0_147] : memref<16x128xf32, #tpu.memory_space<vmem>>, vector<1x128xf32>
    %c1_148 = arith.constant 1 : index
    %291 = arith.index_cast %c15_i32_145 : i32 to index
    %c0_149 = arith.constant 0 : index
    %292 = vector.load %arg13[%c1_148, %291, %c0_149] : memref<3x16x128xf32, #tpu.memory_space<vmem>>, vector<1x1x128xf32>
    %293 = vector.shape_cast %292 : vector<1x1x128xf32> to vector<1x128xf32>
    %294 = vector.shape_cast %290 : vector<1x128xf32> to vector<1x1x128xf32>
    tpu.vector_store %arg13[%c1_148, %291, %c0_149], %294 {strides = array<i32>} : memref<3x16x128xf32, #tpu.memory_space<vmem>>, vector<1x1x128xf32>,
    %c16_i32_150 = arith.constant 16 : i32
    %c0_i32_151 = arith.constant 0 : i32
    %c32_i32 = arith.constant 32 : i32
    %295 = arith.addi %c32_i32, %c0_i32_151 : i32
    %296 = arith.index_cast %295 : i32 to index
    %297 = memref.load %arg0[%296] : memref<48xi32, #tpu.memory_space<smem>>
    %298 = arith.index_cast %297 : i32 to index
    %c0_152 = arith.constant 0 : index
    %299 = vector.load %arg12[%298, %c0_152] : memref<16x128xf32, #tpu.memory_space<vmem>>, vector<1x128xf32>
    %c2 = arith.constant 2 : index
    %300 = arith.index_cast %c0_i32_151 : i32 to index
    %c0_153 = arith.constant 0 : index
    %301 = vector.load %arg13[%c2, %300, %c0_153] : memref<3x16x128xf32, #tpu.memory_space<vmem>>, vector<1x1x128xf32>
    %302 = vector.shape_cast %301 : vector<1x1x128xf32> to vector<1x128xf32>
    %303 = vector.shape_cast %299 : vector<1x128xf32> to vector<1x1x128xf32>
    tpu.vector_store %arg13[%c2, %300, %c0_153], %303 {strides = array<i32>} : memref<3x16x128xf32, #tpu.memory_space<vmem>>, vector<1x1x128xf32>,
    %c1_i32_154 = arith.constant 1 : i32
    %c32_i32_155 = arith.constant 32 : i32
    %304 = arith.addi %c32_i32_155, %c1_i32_154 : i32
    %305 = arith.index_cast %304 : i32 to index
    %306 = memref.load %arg0[%305] : memref<48xi32, #tpu.memory_space<smem>>
    %307 = arith.index_cast %306 : i32 to index
    %c0_156 = arith.constant 0 : index
    %308 = vector.load %arg12[%307, %c0_156] : memref<16x128xf32, #tpu.memory_space<vmem>>, vector<1x128xf32>
    %c2_157 = arith.constant 2 : index
    %309 = arith.index_cast %c1_i32_154 : i32 to index
    %c0_158 = arith.constant 0 : index
    %310 = vector.load %arg13[%c2_157, %309, %c0_158] : memref<3x16x128xf32, #tpu.memory_space<vmem>>, vector<1x1x128xf32>
    %311 = vector.shape_cast %310 : vector<1x1x128xf32> to vector<1x128xf32>
    %312 = vector.shape_cast %308 : vector<1x128xf32> to vector<1x1x128xf32>
    tpu.vector_store %arg13[%c2_157, %309, %c0_158], %312 {strides = array<i32>} : memref<3x16x128xf32, #tpu.memory_space<vmem>>, vector<1x1x128xf32>,
    %c2_i32_159 = arith.constant 2 : i32
    %c32_i32_160 = arith.constant 32 : i32
    %313 = arith.addi %c32_i32_160, %c2_i32_159 : i32
    %314 = arith.index_cast %313 : i32 to index
    %315 = memref.load %arg0[%314] : memref<48xi32, #tpu.memory_space<smem>>
    %316 = arith.index_cast %315 : i32 to index
    %c0_161 = arith.constant 0 : index
    %317 = vector.load %arg12[%316, %c0_161] : memref<16x128xf32, #tpu.memory_space<vmem>>, vector<1x128xf32>
    %c2_162 = arith.constant 2 : index
    %318 = arith.index_cast %c2_i32_159 : i32 to index
    %c0_163 = arith.constant 0 : index
    %319 = vector.load %arg13[%c2_162, %318, %c0_163] : memref<3x16x128xf32, #tpu.memory_space<vmem>>, vector<1x1x128xf32>
    %320 = vector.shape_cast %319 : vector<1x1x128xf32> to vector<1x128xf32>
    %321 = vector.shape_cast %317 : vector<1x128xf32> to vector<1x1x128xf32>
    tpu.vector_store %arg13[%c2_162, %318, %c0_163], %321 {strides = array<i32>} : memref<3x16x128xf32, #tpu.memory_space<vmem>>, vector<1x1x128xf32>,
    %c3_i32_164 = arith.constant 3 : i32
    %c32_i32_165 = arith.constant 32 : i32
    %322 = arith.addi %c32_i32_165, %c3_i32_164 : i32
    %323 = arith.index_cast %322 : i32 to index
    %324 = memref.load %arg0[%323] : memref<48xi32, #tpu.memory_space<smem>>
    %325 = arith.index_cast %324 : i32 to index
    %c0_166 = arith.constant 0 : index
    %326 = vector.load %arg12[%325, %c0_166] : memref<16x128xf32, #tpu.memory_space<vmem>>, vector<1x128xf32>
    %c2_167 = arith.constant 2 : index
    %327 = arith.index_cast %c3_i32_164 : i32 to index
    %c0_168 = arith.constant 0 : index
    %328 = vector.load %arg13[%c2_167, %327, %c0_168] : memref<3x16x128xf32, #tpu.memory_space<vmem>>, vector<1x1x128xf32>
    %329 = vector.shape_cast %328 : vector<1x1x128xf32> to vector<1x128xf32>
    %330 = vector.shape_cast %326 : vector<1x128xf32> to vector<1x1x128xf32>
    tpu.vector_store %arg13[%c2_167, %327, %c0_168], %330 {strides = array<i32>} : memref<3x16x128xf32, #tpu.memory_space<vmem>>, vector<1x1x128xf32>,
    %c4_i32_169 = arith.constant 4 : i32
    %c32_i32_170 = arith.constant 32 : i32
    %331 = arith.addi %c32_i32_170, %c4_i32_169 : i32
    %332 = arith.index_cast %331 : i32 to index
    %333 = memref.load %arg0[%332] : memref<48xi32, #tpu.memory_space<smem>>
    %334 = arith.index_cast %333 : i32 to index
    %c0_171 = arith.constant 0 : index
    %335 = vector.load %arg12[%334, %c0_171] : memref<16x128xf32, #tpu.memory_space<vmem>>, vector<1x128xf32>
    %c2_172 = arith.constant 2 : index
    %336 = arith.index_cast %c4_i32_169 : i32 to index
    %c0_173 = arith.constant 0 : index
    %337 = vector.load %arg13[%c2_172, %336, %c0_173] : memref<3x16x128xf32, #tpu.memory_space<vmem>>, vector<1x1x128xf32>
    %338 = vector.shape_cast %337 : vector<1x1x128xf32> to vector<1x128xf32>
    %339 = vector.shape_cast %335 : vector<1x128xf32> to vector<1x1x128xf32>
    tpu.vector_store %arg13[%c2_172, %336, %c0_173], %339 {strides = array<i32>} : memref<3x16x128xf32, #tpu.memory_space<vmem>>, vector<1x1x128xf32>,
    %c5_i32_174 = arith.constant 5 : i32
    %c32_i32_175 = arith.constant 32 : i32
    %340 = arith.addi %c32_i32_175, %c5_i32_174 : i32
    %341 = arith.index_cast %340 : i32 to index
    %342 = memref.load %arg0[%341] : memref<48xi32, #tpu.memory_space<smem>>
    %343 = arith.index_cast %342 : i32 to index
    %c0_176 = arith.constant 0 : index
    %344 = vector.load %arg12[%343, %c0_176] : memref<16x128xf32, #tpu.memory_space<vmem>>, vector<1x128xf32>
    %c2_177 = arith.constant 2 : index
    %345 = arith.index_cast %c5_i32_174 : i32 to index
    %c0_178 = arith.constant 0 : index
    %346 = vector.load %arg13[%c2_177, %345, %c0_178] : memref<3x16x128xf32, #tpu.memory_space<vmem>>, vector<1x1x128xf32>
    %347 = vector.shape_cast %346 : vector<1x1x128xf32> to vector<1x128xf32>
    %348 = vector.shape_cast %344 : vector<1x128xf32> to vector<1x1x128xf32>
    tpu.vector_store %arg13[%c2_177, %345, %c0_178], %348 {strides = array<i32>} : memref<3x16x128xf32, #tpu.memory_space<vmem>>, vector<1x1x128xf32>,
    %c6_i32_179 = arith.constant 6 : i32
    %c32_i32_180 = arith.constant 32 : i32
    %349 = arith.addi %c32_i32_180, %c6_i32_179 : i32
    %350 = arith.index_cast %349 : i32 to index
    %351 = memref.load %arg0[%350] : memref<48xi32, #tpu.memory_space<smem>>
    %352 = arith.index_cast %351 : i32 to index
    %c0_181 = arith.constant 0 : index
    %353 = vector.load %arg12[%352, %c0_181] : memref<16x128xf32, #tpu.memory_space<vmem>>, vector<1x128xf32>
    %c2_182 = arith.constant 2 : index
    %354 = arith.index_cast %c6_i32_179 : i32 to index
    %c0_183 = arith.constant 0 : index
    %355 = vector.load %arg13[%c2_182, %354, %c0_183] : memref<3x16x128xf32, #tpu.memory_space<vmem>>, vector<1x1x128xf32>
    %356 = vector.shape_cast %355 : vector<1x1x128xf32> to vector<1x128xf32>
    %357 = vector.shape_cast %353 : vector<1x128xf32> to vector<1x1x128xf32>
    tpu.vector_store %arg13[%c2_182, %354, %c0_183], %357 {strides = array<i32>} : memref<3x16x128xf32, #tpu.memory_space<vmem>>, vector<1x1x128xf32>,
    %c7_i32_184 = arith.constant 7 : i32
    %c32_i32_185 = arith.constant 32 : i32
    %358 = arith.addi %c32_i32_185, %c7_i32_184 : i32
    %359 = arith.index_cast %358 : i32 to index
    %360 = memref.load %arg0[%359] : memref<48xi32, #tpu.memory_space<smem>>
    %361 = arith.index_cast %360 : i32 to index
    %c0_186 = arith.constant 0 : index
    %362 = vector.load %arg12[%361, %c0_186] : memref<16x128xf32, #tpu.memory_space<vmem>>, vector<1x128xf32>
    %c2_187 = arith.constant 2 : index
    %363 = arith.index_cast %c7_i32_184 : i32 to index
    %c0_188 = arith.constant 0 : index
    %364 = vector.load %arg13[%c2_187, %363, %c0_188] : memref<3x16x128xf32, #tpu.memory_space<vmem>>, vector<1x1x128xf32>
    %365 = vector.shape_cast %364 : vector<1x1x128xf32> to vector<1x128xf32>
    %366 = vector.shape_cast %362 : vector<1x128xf32> to vector<1x1x128xf32>
    tpu.vector_store %arg13[%c2_187, %363, %c0_188], %366 {strides = array<i32>} : memref<3x16x128xf32, #tpu.memory_space<vmem>>, vector<1x1x128xf32>,
    %c8_i32_189 = arith.constant 8 : i32
    %c32_i32_190 = arith.constant 32 : i32
    %367 = arith.addi %c32_i32_190, %c8_i32_189 : i32
    %368 = arith.index_cast %367 : i32 to index
    %369 = memref.load %arg0[%368] : memref<48xi32, #tpu.memory_space<smem>>
    %370 = arith.index_cast %369 : i32 to index
    %c0_191 = arith.constant 0 : index
    %371 = vector.load %arg12[%370, %c0_191] : memref<16x128xf32, #tpu.memory_space<vmem>>, vector<1x128xf32>
    %c2_192 = arith.constant 2 : index
    %372 = arith.index_cast %c8_i32_189 : i32 to index
    %c0_193 = arith.constant 0 : index
    %373 = vector.load %arg13[%c2_192, %372, %c0_193] : memref<3x16x128xf32, #tpu.memory_space<vmem>>, vector<1x1x128xf32>
    %374 = vector.shape_cast %373 : vector<1x1x128xf32> to vector<1x128xf32>
    %375 = vector.shape_cast %371 : vector<1x128xf32> to vector<1x1x128xf32>
    tpu.vector_store %arg13[%c2_192, %372, %c0_193], %375 {strides = array<i32>} : memref<3x16x128xf32, #tpu.memory_space<vmem>>, vector<1x1x128xf32>,
    %c9_i32_194 = arith.constant 9 : i32
    %c32_i32_195 = arith.constant 32 : i32
    %376 = arith.addi %c32_i32_195, %c9_i32_194 : i32
    %377 = arith.index_cast %376 : i32 to index
    %378 = memref.load %arg0[%377] : memref<48xi32, #tpu.memory_space<smem>>
    %379 = arith.index_cast %378 : i32 to index
    %c0_196 = arith.constant 0 : index
    %380 = vector.load %arg12[%379, %c0_196] : memref<16x128xf32, #tpu.memory_space<vmem>>, vector<1x128xf32>
    %c2_197 = arith.constant 2 : index
    %381 = arith.index_cast %c9_i32_194 : i32 to index
    %c0_198 = arith.constant 0 : index
    %382 = vector.load %arg13[%c2_197, %381, %c0_198] : memref<3x16x128xf32, #tpu.memory_space<vmem>>, vector<1x1x128xf32>
    %383 = vector.shape_cast %382 : vector<1x1x128xf32> to vector<1x128xf32>
    %384 = vector.shape_cast %380 : vector<1x128xf32> to vector<1x1x128xf32>
    tpu.vector_store %arg13[%c2_197, %381, %c0_198], %384 {strides = array<i32>} : memref<3x16x128xf32, #tpu.memory_space<vmem>>, vector<1x1x128xf32>,
    %c10_i32_199 = arith.constant 10 : i32
    %c32_i32_200 = arith.constant 32 : i32
    %385 = arith.addi %c32_i32_200, %c10_i32_199 : i32
    %386 = arith.index_cast %385 : i32 to index
    %387 = memref.load %arg0[%386] : memref<48xi32, #tpu.memory_space<smem>>
    %388 = arith.index_cast %387 : i32 to index
    %c0_201 = arith.constant 0 : index
    %389 = vector.load %arg12[%388, %c0_201] : memref<16x128xf32, #tpu.memory_space<vmem>>, vector<1x128xf32>
    %c2_202 = arith.constant 2 : index
    %390 = arith.index_cast %c10_i32_199 : i32 to index
    %c0_203 = arith.constant 0 : index
    %391 = vector.load %arg13[%c2_202, %390, %c0_203] : memref<3x16x128xf32, #tpu.memory_space<vmem>>, vector<1x1x128xf32>
    %392 = vector.shape_cast %391 : vector<1x1x128xf32> to vector<1x128xf32>
    %393 = vector.shape_cast %389 : vector<1x128xf32> to vector<1x1x128xf32>
    tpu.vector_store %arg13[%c2_202, %390, %c0_203], %393 {strides = array<i32>} : memref<3x16x128xf32, #tpu.memory_space<vmem>>, vector<1x1x128xf32>,
    %c11_i32_204 = arith.constant 11 : i32
    %c32_i32_205 = arith.constant 32 : i32
    %394 = arith.addi %c32_i32_205, %c11_i32_204 : i32
    %395 = arith.index_cast %394 : i32 to index
    %396 = memref.load %arg0[%395] : memref<48xi32, #tpu.memory_space<smem>>
    %397 = arith.index_cast %396 : i32 to index
    %c0_206 = arith.constant 0 : index
    %398 = vector.load %arg12[%397, %c0_206] : memref<16x128xf32, #tpu.memory_space<vmem>>, vector<1x128xf32>
    %c2_207 = arith.constant 2 : index
    %399 = arith.index_cast %c11_i32_204 : i32 to index
    %c0_208 = arith.constant 0 : index
    %400 = vector.load %arg13[%c2_207, %399, %c0_208] : memref<3x16x128xf32, #tpu.memory_space<vmem>>, vector<1x1x128xf32>
    %401 = vector.shape_cast %400 : vector<1x1x128xf32> to vector<1x128xf32>
    %402 = vector.shape_cast %398 : vector<1x128xf32> to vector<1x1x128xf32>
    tpu.vector_store %arg13[%c2_207, %399, %c0_208], %402 {strides = array<i32>} : memref<3x16x128xf32, #tpu.memory_space<vmem>>, vector<1x1x128xf32>,
    %c12_i32_209 = arith.constant 12 : i32
    %c32_i32_210 = arith.constant 32 : i32
    %403 = arith.addi %c32_i32_210, %c12_i32_209 : i32
    %404 = arith.index_cast %403 : i32 to index
    %405 = memref.load %arg0[%404] : memref<48xi32, #tpu.memory_space<smem>>
    %406 = arith.index_cast %405 : i32 to index
    %c0_211 = arith.constant 0 : index
    %407 = vector.load %arg12[%406, %c0_211] : memref<16x128xf32, #tpu.memory_space<vmem>>, vector<1x128xf32>
    %c2_212 = arith.constant 2 : index
    %408 = arith.index_cast %c12_i32_209 : i32 to index
    %c0_213 = arith.constant 0 : index
    %409 = vector.load %arg13[%c2_212, %408, %c0_213] : memref<3x16x128xf32, #tpu.memory_space<vmem>>, vector<1x1x128xf32>
    %410 = vector.shape_cast %409 : vector<1x1x128xf32> to vector<1x128xf32>
    %411 = vector.shape_cast %407 : vector<1x128xf32> to vector<1x1x128xf32>
    tpu.vector_store %arg13[%c2_212, %408, %c0_213], %411 {strides = array<i32>} : memref<3x16x128xf32, #tpu.memory_space<vmem>>, vector<1x1x128xf32>,
    %c13_i32_214 = arith.constant 13 : i32
    %c32_i32_215 = arith.constant 32 : i32
    %412 = arith.addi %c32_i32_215, %c13_i32_214 : i32
    %413 = arith.index_cast %412 : i32 to index
    %414 = memref.load %arg0[%413] : memref<48xi32, #tpu.memory_space<smem>>
    %415 = arith.index_cast %414 : i32 to index
    %c0_216 = arith.constant 0 : index
    %416 = vector.load %arg12[%415, %c0_216] : memref<16x128xf32, #tpu.memory_space<vmem>>, vector<1x128xf32>
    %c2_217 = arith.constant 2 : index
    %417 = arith.index_cast %c13_i32_214 : i32 to index
    %c0_218 = arith.constant 0 : index
    %418 = vector.load %arg13[%c2_217, %417, %c0_218] : memref<3x16x128xf32, #tpu.memory_space<vmem>>, vector<1x1x128xf32>
    %419 = vector.shape_cast %418 : vector<1x1x128xf32> to vector<1x128xf32>
    %420 = vector.shape_cast %416 : vector<1x128xf32> to vector<1x1x128xf32>
    tpu.vector_store %arg13[%c2_217, %417, %c0_218], %420 {strides = array<i32>} : memref<3x16x128xf32, #tpu.memory_space<vmem>>, vector<1x1x128xf32>,
    %c14_i32_219 = arith.constant 14 : i32
    %c32_i32_220 = arith.constant 32 : i32
    %421 = arith.addi %c32_i32_220, %c14_i32_219 : i32
    %422 = arith.index_cast %421 : i32 to index
    %423 = memref.load %arg0[%422] : memref<48xi32, #tpu.memory_space<smem>>
    %424 = arith.index_cast %423 : i32 to index
    %c0_221 = arith.constant 0 : index
    %425 = vector.load %arg12[%424, %c0_221] : memref<16x128xf32, #tpu.memory_space<vmem>>, vector<1x128xf32>
    %c2_222 = arith.constant 2 : index
    %426 = arith.index_cast %c14_i32_219 : i32 to index
    %c0_223 = arith.constant 0 : index
    %427 = vector.load %arg13[%c2_222, %426, %c0_223] : memref<3x16x128xf32, #tpu.memory_space<vmem>>, vector<1x1x128xf32>
    %428 = vector.shape_cast %427 : vector<1x1x128xf32> to vector<1x128xf32>
    %429 = vector.shape_cast %425 : vector<1x128xf32> to vector<1x1x128xf32>
    tpu.vector_store %arg13[%c2_222, %426, %c0_223], %429 {strides = array<i32>} : memref<3x16x128xf32, #tpu.memory_space<vmem>>, vector<1x1x128xf32>,
    %c15_i32_224 = arith.constant 15 : i32
    %c32_i32_225 = arith.constant 32 : i32
    %430 = arith.addi %c32_i32_225, %c15_i32_224 : i32
    %431 = arith.index_cast %430 : i32 to index
    %432 = memref.load %arg0[%431] : memref<48xi32, #tpu.memory_space<smem>>
    %433 = arith.index_cast %432 : i32 to index
    %c0_226 = arith.constant 0 : index
    %434 = vector.load %arg12[%433, %c0_226] : memref<16x128xf32, #tpu.memory_space<vmem>>, vector<1x128xf32>
    %c2_227 = arith.constant 2 : index
    %435 = arith.index_cast %c15_i32_224 : i32 to index
    %c0_228 = arith.constant 0 : index
    %436 = vector.load %arg13[%c2_227, %435, %c0_228] : memref<3x16x128xf32, #tpu.memory_space<vmem>>, vector<1x1x128xf32>
    %437 = vector.shape_cast %436 : vector<1x1x128xf32> to vector<1x128xf32>
    %438 = vector.shape_cast %434 : vector<1x128xf32> to vector<1x1x128xf32>
    tpu.vector_store %arg13[%c2_227, %435, %c0_228], %438 {strides = array<i32>} : memref<3x16x128xf32, #tpu.memory_space<vmem>>, vector<1x1x128xf32>,
    %c16_i32_229 = arith.constant 16 : i32
    %c0_230 = arith.constant 0 : index
    %c0_231 = arith.constant 0 : index
    %439 = vector.load %arg12[%c0_230, %c0_231] : memref<16x128xf32, #tpu.memory_space<vmem>>, vector<16x128xf32>
    %c0_232 = arith.constant 0 : index
    %c0_233 = arith.constant 0 : index
    %440 = vector.load %arg8[%c0_232, %c0_233] : memref<128x128xf32, #tpu.memory_space<vmem>>, vector<128x128xf32>
    %cst_234 = arith.constant dense<0.000000e+00> : vector<16x128xf32>
    %441 = tpu.matmul %439, %440, %cst_234 {dimension_numbers = #tpu.dot_dimension_numbers<[1], [0], [0], [1], [0, 0, 1, 1], [], []>} : vector<16x128xf32>, vector<128x128xf32>, vector<16x128xf32> -> vector<16x128xf32>
    %c0_235 = arith.constant 0 : index
    %c0_236 = arith.constant 0 : index
    %442 = vector.load %arg7[%c0_235, %c0_236] : memref<1x128xf32, #tpu.memory_space<vmem>>, vector<1x128xf32>
    %c0_237 = arith.constant 0 : index
    %c0_238 = arith.constant 0 : index
    %c0_239 = arith.constant 0 : index
    %443 = vector.load %arg2[%c0_237, %c0_238, %c0_239] : memref<3x16x4xf32, #tpu.memory_space<vmem>>, vector<1x16x1xf32>
    %444 = vector.shape_cast %443 : vector<1x16x1xf32> to vector<16x1xf32>
    %c0_240 = arith.constant 0 : index
    %c0_241 = arith.constant 0 : index
    %445 = vector.load %arg6[%c0_240, %c0_241] : memref<4x128xf32, #tpu.memory_space<vmem>>, vector<1x128xf32>
    %446 = vector.broadcast %444 : vector<16x1xf32> to vector<16x128xf32>
    %447 = vector.broadcast %445 : vector<1x128xf32> to vector<16x128xf32>
    %448 = arith.mulf %446, %447 : vector<16x128xf32>
    %449 = vector.broadcast %442 : vector<1x128xf32> to vector<16x128xf32>
    %450 = arith.addf %449, %448 : vector<16x128xf32>
    %c0_242 = arith.constant 0 : index
    %c0_243 = arith.constant 0 : index
    %c1_244 = arith.constant 1 : index
    %451 = vector.load %arg2[%c0_242, %c0_243, %c1_244] : memref<3x16x4xf32, #tpu.memory_space<vmem>>, vector<1x16x1xf32>
    %452 = vector.shape_cast %451 : vector<1x16x1xf32> to vector<16x1xf32>
    %c1_245 = arith.constant 1 : index
    %c0_246 = arith.constant 0 : index
    %453 = vector.load %arg6[%c1_245, %c0_246] : memref<4x128xf32, #tpu.memory_space<vmem>>, vector<1x128xf32>
    %454 = vector.broadcast %452 : vector<16x1xf32> to vector<16x128xf32>
    %455 = vector.broadcast %453 : vector<1x128xf32> to vector<16x128xf32>
    %456 = arith.mulf %454, %455 : vector<16x128xf32>
    %457 = arith.addf %450, %456 : vector<16x128xf32>
    %c0_247 = arith.constant 0 : index
    %c0_248 = arith.constant 0 : index
    %c2_249 = arith.constant 2 : index
    %458 = vector.load %arg2[%c0_247, %c0_248, %c2_249] : memref<3x16x4xf32, #tpu.memory_space<vmem>>, vector<1x16x1xf32>
    %459 = vector.shape_cast %458 : vector<1x16x1xf32> to vector<16x1xf32>
    %c2_250 = arith.constant 2 : index
    %c0_251 = arith.constant 0 : index
    %460 = vector.load %arg6[%c2_250, %c0_251] : memref<4x128xf32, #tpu.memory_space<vmem>>, vector<1x128xf32>
    %461 = vector.broadcast %459 : vector<16x1xf32> to vector<16x128xf32>
    %462 = vector.broadcast %460 : vector<1x128xf32> to vector<16x128xf32>
    %463 = arith.mulf %461, %462 : vector<16x128xf32>
    %464 = arith.addf %457, %463 : vector<16x128xf32>
    %c0_252 = arith.constant 0 : index
    %c0_253 = arith.constant 0 : index
    %c3 = arith.constant 3 : index
    %465 = vector.load %arg2[%c0_252, %c0_253, %c3] : memref<3x16x4xf32, #tpu.memory_space<vmem>>, vector<1x16x1xf32>
    %466 = vector.shape_cast %465 : vector<1x16x1xf32> to vector<16x1xf32>
    %c3_254 = arith.constant 3 : index
    %c0_255 = arith.constant 0 : index
    %467 = vector.load %arg6[%c3_254, %c0_255] : memref<4x128xf32, #tpu.memory_space<vmem>>, vector<1x128xf32>
    %468 = vector.broadcast %466 : vector<16x1xf32> to vector<16x128xf32>
    %469 = vector.broadcast %467 : vector<1x128xf32> to vector<16x128xf32>
    %470 = arith.mulf %468, %469 : vector<16x128xf32>
    %471 = arith.addf %464, %470 : vector<16x128xf32>
    %c0_256 = arith.constant 0 : index
    %c0_257 = arith.constant 0 : index
    %c0_258 = arith.constant 0 : index
    %472 = vector.load %arg13[%c0_256, %c0_257, %c0_258] : memref<3x16x128xf32, #tpu.memory_space<vmem>>, vector<1x16x128xf32>
    %473 = vector.shape_cast %472 : vector<1x16x128xf32> to vector<16x128xf32>
    %474 = arith.addf %473, %471 : vector<16x128xf32>
    %c0_259 = arith.constant 0 : index
    %c0_260 = arith.constant 0 : index
    %c0_261 = arith.constant 0 : index
    %475 = vector.load %arg13[%c0_259, %c0_260, %c0_261] : memref<3x16x128xf32, #tpu.memory_space<vmem>>, vector<1x16x128xf32>
    %476 = vector.shape_cast %475 : vector<1x16x128xf32> to vector<16x128xf32>
    %477 = vector.shape_cast %474 : vector<16x128xf32> to vector<1x16x128xf32>
    tpu.vector_store %arg13[%c0_259, %c0_260, %c0_261], %477 {strides = array<i32>} : memref<3x16x128xf32, #tpu.memory_space<vmem>>, vector<1x16x128xf32>,
    %c0_262 = arith.constant 0 : index
    %c0_263 = arith.constant 0 : index
    %478 = vector.load %arg9[%c0_262, %c0_263] : memref<128x128xf32, #tpu.memory_space<vmem>>, vector<128x128xf32>
    %cst_264 = arith.constant dense<0.000000e+00> : vector<16x128xf32>
    %479 = tpu.matmul %474, %478, %cst_264 {dimension_numbers = #tpu.dot_dimension_numbers<[1], [0], [0], [1], [0, 0, 1, 1], [], []>} : vector<16x128xf32>, vector<128x128xf32>, vector<16x128xf32> -> vector<16x128xf32>
    %480 = arith.addf %441, %479 : vector<16x128xf32>
    %c0_265 = arith.constant 0 : index
    %c0_266 = arith.constant 0 : index
    %c0_267 = arith.constant 0 : index
    %481 = vector.load %arg14[%c0_265, %c0_266, %c0_267] : memref<3x16x128xf32, #tpu.memory_space<vmem>>, vector<1x16x128xf32>
    %482 = vector.shape_cast %481 : vector<1x16x128xf32> to vector<16x128xf32>
    %483 = vector.shape_cast %480 : vector<16x128xf32> to vector<1x16x128xf32>
    tpu.vector_store %arg14[%c0_265, %c0_266, %c0_267], %483 {strides = array<i32>} : memref<3x16x128xf32, #tpu.memory_space<vmem>>, vector<1x16x128xf32>,
    %c0_268 = arith.constant 0 : index
    %c0_269 = arith.constant 0 : index
    %484 = vector.load %arg7[%c0_268, %c0_269] : memref<1x128xf32, #tpu.memory_space<vmem>>, vector<1x128xf32>
    %c1_270 = arith.constant 1 : index
    %c0_271 = arith.constant 0 : index
    %c0_272 = arith.constant 0 : index
    %485 = vector.load %arg2[%c1_270, %c0_271, %c0_272] : memref<3x16x4xf32, #tpu.memory_space<vmem>>, vector<1x16x1xf32>
    %486 = vector.shape_cast %485 : vector<1x16x1xf32> to vector<16x1xf32>
    %c0_273 = arith.constant 0 : index
    %c0_274 = arith.constant 0 : index
    %487 = vector.load %arg6[%c0_273, %c0_274] : memref<4x128xf32, #tpu.memory_space<vmem>>, vector<1x128xf32>
    %488 = vector.broadcast %486 : vector<16x1xf32> to vector<16x128xf32>
    %489 = vector.broadcast %487 : vector<1x128xf32> to vector<16x128xf32>
    %490 = arith.mulf %488, %489 : vector<16x128xf32>
    %491 = vector.broadcast %484 : vector<1x128xf32> to vector<16x128xf32>
    %492 = arith.addf %491, %490 : vector<16x128xf32>
    %c1_275 = arith.constant 1 : index
    %c0_276 = arith.constant 0 : index
    %c1_277 = arith.constant 1 : index
    %493 = vector.load %arg2[%c1_275, %c0_276, %c1_277] : memref<3x16x4xf32, #tpu.memory_space<vmem>>, vector<1x16x1xf32>
    %494 = vector.shape_cast %493 : vector<1x16x1xf32> to vector<16x1xf32>
    %c1_278 = arith.constant 1 : index
    %c0_279 = arith.constant 0 : index
    %495 = vector.load %arg6[%c1_278, %c0_279] : memref<4x128xf32, #tpu.memory_space<vmem>>, vector<1x128xf32>
    %496 = vector.broadcast %494 : vector<16x1xf32> to vector<16x128xf32>
    %497 = vector.broadcast %495 : vector<1x128xf32> to vector<16x128xf32>
    %498 = arith.mulf %496, %497 : vector<16x128xf32>
    %499 = arith.addf %492, %498 : vector<16x128xf32>
    %c1_280 = arith.constant 1 : index
    %c0_281 = arith.constant 0 : index
    %c2_282 = arith.constant 2 : index
    %500 = vector.load %arg2[%c1_280, %c0_281, %c2_282] : memref<3x16x4xf32, #tpu.memory_space<vmem>>, vector<1x16x1xf32>
    %501 = vector.shape_cast %500 : vector<1x16x1xf32> to vector<16x1xf32>
    %c2_283 = arith.constant 2 : index
    %c0_284 = arith.constant 0 : index
    %502 = vector.load %arg6[%c2_283, %c0_284] : memref<4x128xf32, #tpu.memory_space<vmem>>, vector<1x128xf32>
    %503 = vector.broadcast %501 : vector<16x1xf32> to vector<16x128xf32>
    %504 = vector.broadcast %502 : vector<1x128xf32> to vector<16x128xf32>
    %505 = arith.mulf %503, %504 : vector<16x128xf32>
    %506 = arith.addf %499, %505 : vector<16x128xf32>
    %c1_285 = arith.constant 1 : index
    %c0_286 = arith.constant 0 : index
    %c3_287 = arith.constant 3 : index
    %507 = vector.load %arg2[%c1_285, %c0_286, %c3_287] : memref<3x16x4xf32, #tpu.memory_space<vmem>>, vector<1x16x1xf32>
    %508 = vector.shape_cast %507 : vector<1x16x1xf32> to vector<16x1xf32>
    %c3_288 = arith.constant 3 : index
    %c0_289 = arith.constant 0 : index
    %509 = vector.load %arg6[%c3_288, %c0_289] : memref<4x128xf32, #tpu.memory_space<vmem>>, vector<1x128xf32>
    %510 = vector.broadcast %508 : vector<16x1xf32> to vector<16x128xf32>
    %511 = vector.broadcast %509 : vector<1x128xf32> to vector<16x128xf32>
    %512 = arith.mulf %510, %511 : vector<16x128xf32>
    %513 = arith.addf %506, %512 : vector<16x128xf32>
    %c1_290 = arith.constant 1 : index
    %c0_291 = arith.constant 0 : index
    %c0_292 = arith.constant 0 : index
    %514 = vector.load %arg13[%c1_290, %c0_291, %c0_292] : memref<3x16x128xf32, #tpu.memory_space<vmem>>, vector<1x16x128xf32>
    %515 = vector.shape_cast %514 : vector<1x16x128xf32> to vector<16x128xf32>
    %516 = arith.addf %515, %513 : vector<16x128xf32>
    %c1_293 = arith.constant 1 : index
    %c0_294 = arith.constant 0 : index
    %c0_295 = arith.constant 0 : index
    %517 = vector.load %arg13[%c1_293, %c0_294, %c0_295] : memref<3x16x128xf32, #tpu.memory_space<vmem>>, vector<1x16x128xf32>
    %518 = vector.shape_cast %517 : vector<1x16x128xf32> to vector<16x128xf32>
    %519 = vector.shape_cast %516 : vector<16x128xf32> to vector<1x16x128xf32>
    tpu.vector_store %arg13[%c1_293, %c0_294, %c0_295], %519 {strides = array<i32>} : memref<3x16x128xf32, #tpu.memory_space<vmem>>, vector<1x16x128xf32>,
    %c0_296 = arith.constant 0 : index
    %c0_297 = arith.constant 0 : index
    %520 = vector.load %arg9[%c0_296, %c0_297] : memref<128x128xf32, #tpu.memory_space<vmem>>, vector<128x128xf32>
    %cst_298 = arith.constant dense<0.000000e+00> : vector<16x128xf32>
    %521 = tpu.matmul %516, %520, %cst_298 {dimension_numbers = #tpu.dot_dimension_numbers<[1], [0], [0], [1], [0, 0, 1, 1], [], []>} : vector<16x128xf32>, vector<128x128xf32>, vector<16x128xf32> -> vector<16x128xf32>
    %522 = arith.addf %441, %521 : vector<16x128xf32>
    %c1_299 = arith.constant 1 : index
    %c0_300 = arith.constant 0 : index
    %c0_301 = arith.constant 0 : index
    %523 = vector.load %arg14[%c1_299, %c0_300, %c0_301] : memref<3x16x128xf32, #tpu.memory_space<vmem>>, vector<1x16x128xf32>
    %524 = vector.shape_cast %523 : vector<1x16x128xf32> to vector<16x128xf32>
    %525 = vector.shape_cast %522 : vector<16x128xf32> to vector<1x16x128xf32>
    tpu.vector_store %arg14[%c1_299, %c0_300, %c0_301], %525 {strides = array<i32>} : memref<3x16x128xf32, #tpu.memory_space<vmem>>, vector<1x16x128xf32>,
    %c0_302 = arith.constant 0 : index
    %c0_303 = arith.constant 0 : index
    %526 = vector.load %arg7[%c0_302, %c0_303] : memref<1x128xf32, #tpu.memory_space<vmem>>, vector<1x128xf32>
    %c2_304 = arith.constant 2 : index
    %c0_305 = arith.constant 0 : index
    %c0_306 = arith.constant 0 : index
    %527 = vector.load %arg2[%c2_304, %c0_305, %c0_306] : memref<3x16x4xf32, #tpu.memory_space<vmem>>, vector<1x16x1xf32>
    %528 = vector.shape_cast %527 : vector<1x16x1xf32> to vector<16x1xf32>
    %c0_307 = arith.constant 0 : index
    %c0_308 = arith.constant 0 : index
    %529 = vector.load %arg6[%c0_307, %c0_308] : memref<4x128xf32, #tpu.memory_space<vmem>>, vector<1x128xf32>
    %530 = vector.broadcast %528 : vector<16x1xf32> to vector<16x128xf32>
    %531 = vector.broadcast %529 : vector<1x128xf32> to vector<16x128xf32>
    %532 = arith.mulf %530, %531 : vector<16x128xf32>
    %533 = vector.broadcast %526 : vector<1x128xf32> to vector<16x128xf32>
    %534 = arith.addf %533, %532 : vector<16x128xf32>
    %c2_309 = arith.constant 2 : index
    %c0_310 = arith.constant 0 : index
    %c1_311 = arith.constant 1 : index
    %535 = vector.load %arg2[%c2_309, %c0_310, %c1_311] : memref<3x16x4xf32, #tpu.memory_space<vmem>>, vector<1x16x1xf32>
    %536 = vector.shape_cast %535 : vector<1x16x1xf32> to vector<16x1xf32>
    %c1_312 = arith.constant 1 : index
    %c0_313 = arith.constant 0 : index
    %537 = vector.load %arg6[%c1_312, %c0_313] : memref<4x128xf32, #tpu.memory_space<vmem>>, vector<1x128xf32>
    %538 = vector.broadcast %536 : vector<16x1xf32> to vector<16x128xf32>
    %539 = vector.broadcast %537 : vector<1x128xf32> to vector<16x128xf32>
    %540 = arith.mulf %538, %539 : vector<16x128xf32>
    %541 = arith.addf %534, %540 : vector<16x128xf32>
    %c2_314 = arith.constant 2 : index
    %c0_315 = arith.constant 0 : index
    %c2_316 = arith.constant 2 : index
    %542 = vector.load %arg2[%c2_314, %c0_315, %c2_316] : memref<3x16x4xf32, #tpu.memory_space<vmem>>, vector<1x16x1xf32>
    %543 = vector.shape_cast %542 : vector<1x16x1xf32> to vector<16x1xf32>
    %c2_317 = arith.constant 2 : index
    %c0_318 = arith.constant 0 : index
    %544 = vector.load %arg6[%c2_317, %c0_318] : memref<4x128xf32, #tpu.memory_space<vmem>>, vector<1x128xf32>
    %545 = vector.broadcast %543 : vector<16x1xf32> to vector<16x128xf32>
    %546 = vector.broadcast %544 : vector<1x128xf32> to vector<16x128xf32>
    %547 = arith.mulf %545, %546 : vector<16x128xf32>
    %548 = arith.addf %541, %547 : vector<16x128xf32>
    %c2_319 = arith.constant 2 : index
    %c0_320 = arith.constant 0 : index
    %c3_321 = arith.constant 3 : index
    %549 = vector.load %arg2[%c2_319, %c0_320, %c3_321] : memref<3x16x4xf32, #tpu.memory_space<vmem>>, vector<1x16x1xf32>
    %550 = vector.shape_cast %549 : vector<1x16x1xf32> to vector<16x1xf32>
    %c3_322 = arith.constant 3 : index
    %c0_323 = arith.constant 0 : index
    %551 = vector.load %arg6[%c3_322, %c0_323] : memref<4x128xf32, #tpu.memory_space<vmem>>, vector<1x128xf32>
    %552 = vector.broadcast %550 : vector<16x1xf32> to vector<16x128xf32>
    %553 = vector.broadcast %551 : vector<1x128xf32> to vector<16x128xf32>
    %554 = arith.mulf %552, %553 : vector<16x128xf32>
    %555 = arith.addf %548, %554 : vector<16x128xf32>
    %c2_324 = arith.constant 2 : index
    %c0_325 = arith.constant 0 : index
    %c0_326 = arith.constant 0 : index
    %556 = vector.load %arg13[%c2_324, %c0_325, %c0_326] : memref<3x16x128xf32, #tpu.memory_space<vmem>>, vector<1x16x128xf32>
    %557 = vector.shape_cast %556 : vector<1x16x128xf32> to vector<16x128xf32>
    %558 = arith.addf %557, %555 : vector<16x128xf32>
    %c2_327 = arith.constant 2 : index
    %c0_328 = arith.constant 0 : index
    %c0_329 = arith.constant 0 : index
    %559 = vector.load %arg13[%c2_327, %c0_328, %c0_329] : memref<3x16x128xf32, #tpu.memory_space<vmem>>, vector<1x16x128xf32>
    %560 = vector.shape_cast %559 : vector<1x16x128xf32> to vector<16x128xf32>
    %561 = vector.shape_cast %558 : vector<16x128xf32> to vector<1x16x128xf32>
    tpu.vector_store %arg13[%c2_327, %c0_328, %c0_329], %561 {strides = array<i32>} : memref<3x16x128xf32, #tpu.memory_space<vmem>>, vector<1x16x128xf32>,
    %c0_330 = arith.constant 0 : index
    %c0_331 = arith.constant 0 : index
    %562 = vector.load %arg9[%c0_330, %c0_331] : memref<128x128xf32, #tpu.memory_space<vmem>>, vector<128x128xf32>
    %cst_332 = arith.constant dense<0.000000e+00> : vector<16x128xf32>
    %563 = tpu.matmul %558, %562, %cst_332 {dimension_numbers = #tpu.dot_dimension_numbers<[1], [0], [0], [1], [0, 0, 1, 1], [], []>} : vector<16x128xf32>, vector<128x128xf32>, vector<16x128xf32> -> vector<16x128xf32>
    %564 = arith.addf %441, %563 : vector<16x128xf32>
    %c2_333 = arith.constant 2 : index
    %c0_334 = arith.constant 0 : index
    %c0_335 = arith.constant 0 : index
    %565 = vector.load %arg14[%c2_333, %c0_334, %c0_335] : memref<3x16x128xf32, #tpu.memory_space<vmem>>, vector<1x16x128xf32>
    %566 = vector.shape_cast %565 : vector<1x16x128xf32> to vector<16x128xf32>
    %567 = vector.shape_cast %564 : vector<16x128xf32> to vector<1x16x128xf32>
    tpu.vector_store %arg14[%c2_333, %c0_334, %c0_335], %567 {strides = array<i32>} : memref<3x16x128xf32, #tpu.memory_space<vmem>>, vector<1x16x128xf32>,
    %c0_336 = arith.constant 0 : index
    %c0_337 = arith.constant 0 : index
    %c0_338 = arith.constant 0 : index
    %568 = vector.load %arg14[%c0_336, %c0_337, %c0_338] : memref<3x16x128xf32, #tpu.memory_space<vmem>>, vector<3x16x128xf32>
    %cst_339 = arith.constant 0.000000e+00 : f32
    %569 = vector.broadcast %cst_339 : f32 to vector<3x16x128xf32>
    %570 = arith.cmpf oge, %568, %569 : vector<3x16x128xf32>
    %cst_340 = arith.constant 2.000000e-01 : f32
    %571 = vector.broadcast %cst_340 : f32 to vector<3x16x128xf32>
    %572 = arith.mulf %571, %568 : vector<3x16x128xf32>
    %573 = arith.select %570, %568, %572 : vector<3x16x128xi1>, vector<3x16x128xf32>
    %cst_341 = arith.constant dense<0xFF800000> : vector<16x128xf32>
    %574 = vector.multi_reduction <maximumf>, %573, %cst_341 [0] : vector<3x16x128xf32> to vector<16x128xf32>
    %575 = vector.shape_cast %574 : vector<16x128xf32> to vector<1x16x128xf32>
    %576 = vector.broadcast %575 : vector<1x16x128xf32> to vector<3x16x128xf32>
    %577 = arith.subf %573, %576 : vector<3x16x128xf32>
    %578 = math.exp %577 : vector<3x16x128xf32>
    %c0_342 = arith.constant 0 : index
    %c0_343 = arith.constant 0 : index
    %c0_344 = arith.constant 0 : index
    %579 = vector.load %arg3[%c0_342, %c0_343, %c0_344] : memref<3x16x1xf32, #tpu.memory_space<vmem>>, vector<3x16x1xf32>
    %580 = vector.broadcast %579 : vector<3x16x1xf32> to vector<3x16x128xf32>
    %581 = arith.mulf %578, %580 : vector<3x16x128xf32>
    %cst_345 = arith.constant dense<0.000000e+00> : vector<16x128xf32>
    %582 = vector.multi_reduction <add>, %581, %cst_345 [0] : vector<3x16x128xf32> to vector<16x128xf32>
    %cst_346 = arith.constant 0.000000e+00 : f32
    %583 = vector.broadcast %cst_346 : f32 to vector<16x128xf32>
    %584 = arith.cmpf ogt, %582, %583 : vector<16x128xf32>
    %cst_347 = arith.constant 1.000000e+00 : f32
    %585 = vector.broadcast %cst_347 : f32 to vector<16x128xf32>
    %586 = arith.select %584, %582, %585 : vector<16x128xi1>, vector<16x128xf32>
    %587 = tpu.reciprocal %586 {approx = true} : vector<16x128xf32> -> vector<16x128xf32>
    %c0_348 = arith.constant 0 : index
    %c0_349 = arith.constant 0 : index
    %c0_350 = arith.constant 0 : index
    %588 = vector.load %arg13[%c0_348, %c0_349, %c0_350] : memref<3x16x128xf32, #tpu.memory_space<vmem>>, vector<3x16x128xf32>
    %589 = arith.mulf %588, %581 : vector<3x16x128xf32>
    %cst_351 = arith.constant dense<0.000000e+00> : vector<16x128xf32>
    %590 = vector.multi_reduction <add>, %589, %cst_351 [0] : vector<3x16x128xf32> to vector<16x128xf32>
    %591 = arith.mulf %590, %587 : vector<16x128xf32>
    %592 = vector.extract_strided_slice %591 {offsets = [0, 0], sizes = [16, 32], strides = [1, 1]} : vector<16x128xf32> to vector<16x32xf32>
    %593 = vector.extract_strided_slice %591 {offsets = [0, 32], sizes = [16, 32], strides = [1, 1]} : vector<16x128xf32> to vector<16x32xf32>
    %594 = arith.addf %592, %593 : vector<16x32xf32>
    %cst_352 = arith.constant 5.000000e-01 : f32
    %595 = vector.broadcast %cst_352 : f32 to vector<16x32xf32>
    %596 = arith.mulf %594, %595 : vector<16x32xf32>
    %c0_353 = arith.constant 0 : index
    %c0_354 = arith.constant 0 : index
    %597 = vector.load %arg10[%c0_353, %c0_354] : memref<1x128xf32, #tpu.memory_space<vmem>>, vector<1x32xf32>
    %598 = vector.broadcast %597 : vector<1x32xf32> to vector<16x32xf32>
    %599 = arith.addf %596, %598 : vector<16x32xf32>
    %cst_355 = arith.constant 9.99999997E-7 : f32
    %600 = vector.broadcast %cst_355 : f32 to vector<16x32xf32>
    %601 = arith.addf %599, %600 : vector<16x32xf32>
    %cst_356 = arith.constant 0.000000e+00 : f32
    %602 = vector.broadcast %cst_356 : f32 to vector<16x32xf32>
    %603 = arith.maximumf %601, %602 : vector<16x32xf32>
    %cst_357 = arith.constant 0.000000e+00 : bf16
    %604 = vector.broadcast %cst_357 : bf16 to vector<16x128xbf16>
    %c0_358 = arith.constant 0 : index
    %c0_359 = arith.constant 0 : index
    %605 = vector.load %arg11[%c0_358, %c0_359] : memref<16x128xbf16, #tpu.memory_space<vmem>>, vector<16x128xbf16>
    tpu.vector_store %arg11[%c0_358, %c0_359], %604 {strides = array<i32>} : memref<16x128xbf16, #tpu.memory_space<vmem>>, vector<16x128xbf16>,
    %606 = arith.truncf %603 : vector<16x32xf32> to vector<16x32xbf16>
    %c0_360 = arith.constant 0 : index
    %c0_361 = arith.constant 0 : index
    %607 = vector.load %arg11[%c0_360, %c0_361] : memref<16x128xbf16, #tpu.memory_space<vmem>>, vector<16x32xbf16>
    tpu.vector_store %arg11[%c0_360, %c0_361], %606 {strides = array<i32>} : memref<16x128xbf16, #tpu.memory_space<vmem>>, vector<16x32xbf16>,
    return
  }
}

</mosaic_0001>

<bundles_post_ra>
// kernel: tpu_custom_call.1
= control target key start
LH: loop header
LB: loop body
LE: loop exit
PB: predicated region body
PF: predicated region fallthrough
CT: control target
= control target key end

     0   :  { %s2537_s0 = inlined_call_operand.vmem [shape: s32[48], index: 0, kind: input, shape index: {}]   ;;  %s2538_s1 = inlined_call_operand.vmem [shape: bf16[16,128], index: 1, kind: input, shape index: {}]   ;;  %s2539_s2 = inlined_call_operand.vmem [shape: f32[3,16,4], index: 2, kind: input, shape index: {}]   ;;  %s2540_s3 = inlined_call_operand.vmem [shape: f32[3,16,1], index: 3, kind: input, shape index: {}]   ;;  %s2541_s4 = inlined_call_operand.hbm [shape: bf16[128,128], index: 4, kind: input, shape index: {}]   ;;  %s2542_s5 = inlined_call_operand.hbm [shape: f32[1,128], index: 5, kind: input, shape index: {}]   ;;  %s2543_s6 = inlined_call_operand.vmem [shape: f32[4,128], index: 6, kind: input, shape index: {}]   ;;  %s2544_s7 = inlined_call_operand.hbm [shape: f32[1,128], index: 7, kind: input, shape index: {}]   ;;  %s2545_s8 = inlined_call_operand.vmem [shape: f32[128,128], index: 8, kind: input, shape index: {}]   ;;  %s2546_s9 = inlined_call_operand.hbm [shape: f32[128,128], index: 9, kind: input, shape index: {}]   ;;  %s2547_s10 = inlined_call_operand.vmem [shape: f32[1,128], index: 10, kind: input, shape index: {}]   ;;  %s2548_s11 = inlined_call_operand.hbm [shape: bf16[16,128], index: 11, kind: output, shape index: {}]  }
   0x1   :  { %2552 = sst [smem:[#allocation44_spill]] %s2547_s10 }
   0x2   :  { %2553 = sst [smem:[#allocation45_spill]] %s2548_s11 }
   0x3   :  { %16 = vsyncpa [#allocation8], 0 }
   0x4   :  { %17 = vsyncpa [#allocation6], 0 }
   0x5   :  { %18 = vsyncpa [#allocation11], 0 }
   0x6   :  { %19 = vsyncpa [#allocation14], 0 }
   0x7   :  { %20 = vsyncpa [#allocation7], 0  ;;  %s27_s19 = sshll.u32 %s2537_s0, 4  ;;  %s1923_s20 = smov [#allocation10]   ;;  %s28_s19 = int_to_ptr.vmem [resolvable:$true] %s27_s19 }
   0x8   :  { %s55_s21 = sshll.u32 %s1923_s20, 4  ;;  %s1791_s24 = scalar_lea.hbm %s2542_s5, 16  ;;  %s56_s21 = int_to_ptr.vmem [resolvable:$true] %s55_s21 }
   0x9   :  { %p1792_p0 = scmp.ne.s32.totalorder %s2542_s5, %s1791_s24  ;;  %p1795_p1 = scmp.lt.u32.totalorder %s1791_s24, %s2542_s5 }
   0xb   :  { %p1797_p2 = pnand %p1795_p1, %p1792_p0 }
   0xd   :  { %1800 = shalt.err (!%p1797_p2)
}
   0xe   :  { %s1801_s29 = scalar_lea.vmem %s56_s21, 16  ;;  %s1805_s0 = scalar_lea.vmem %s56_s21, 32 }
   0xf   :  { %p1802_p3 = scmp.ne.s32.totalorder %s56_s21, %s1801_s29  ;;  %p1806_p4 = scmp.lt.s32.totalorder %s56_s21, %s56_s21 }
  0x10   :  { %p1807_p5 = scmp.lt.s32.totalorder %s1805_s0, %s1801_s29 }
  0x12   :  { %p1808_p6 = por %p1807_p5, %p1806_p4 }
  0x14   :  { %p1809_p7 = pnand %p1808_p6, %p1802_p3 }
  0x16   :  { %1812 = shalt.err (!%p1809_p7)
}
  0x17   :  { %58 = dma.hbm_to_vmem [thread:$0]  %s2542_s5, 16, %s56_s21, [#allocation11]  }
  0x18   :  { %s1813_s13 = scalar_lea.vmem %s28_s19, 16  ;;  %p1818_p9 = scmp.lt.s32.totalorder %s28_s19, %s28_s19 }
  0x19   :  { %p1814_p8 = scmp.ne.s32.totalorder %s28_s19, %s1813_s13  ;;  %p1819_p10 = scmp.lt.s32.totalorder %s1813_s13, %s1813_s13 }
  0x1b   :  { %p1820_p11 = por %p1819_p10, %p1818_p9 }
  0x1d   :  { %p1821_p12 = pnand %p1820_p11, %p1814_p8 }
  0x1f   :  { %1824 = shalt.err (!%p1821_p12)
}
  0x20   :  { %s1924_s14 = smov [#allocation5]   ;;  %s1925_s15 = smov [#allocation9]  }
  0x21   :  { %30 = dma.vmem_to_smem %s28_s19, 16, %s1924_s14, [#allocation8]  }
  0x22   :  { %s42_s16 = sshll.u32 %s1925_s15, 4  ;;  %s1825_s20 = scalar_lea.hbm %s2541_s4, 1024  ;;  %s43_s16 = int_to_ptr.vmem [resolvable:$true] %s42_s16 }
  0x23   :  { %p1826_p13 = scmp.ne.s32.totalorder %s2541_s4, %s1825_s20  ;;  %p1829_p0 = scmp.lt.u32.totalorder %s1825_s20, %s2541_s4 }
  0x25   :  { %p1831_p1 = pnand %p1829_p0, %p1826_p13 }
  0x27   :  { %1834 = shalt.err (!%p1831_p1)
}
  0x28   :  { %s1835_s24 = scalar_lea.vmem %s43_s16, 1024  ;;  %p1840_p3 = scmp.lt.s32.totalorder %s43_s16, %s43_s16 }
  0x29   :  { %p1836_p2 = scmp.ne.s32.totalorder %s43_s16, %s1835_s24  ;;  %p1841_p4 = scmp.lt.s32.totalorder %s1835_s24, %s1835_s24 }
  0x2b   :  { %p1842_p5 = por %p1841_p4, %p1840_p3 }
  0x2d   :  { %p1843_p6 = pnand %p1842_p5, %p1836_p2 }
  0x2f   :  { %1846 = shalt.err (!%p1843_p6)
}
  0x30   :  { %s2549_s19 = smov 64   ;;  %s2550_s25 = smov 4  }
  0x31   :  { %48 = dma.hbm_to_vmem [thread:$0]  %s2541_s4, 1024, %s43_s16, [#allocation6], %s2549_s19, %s2549_s19, %s2550_s25  }
  0x32   :  { %s1928_s28 = smov [#allocation12]   ;;  %s1929_s0 = smov [#allocation13]  }
  0x33   :  { %s67_s29 = sshll.u32 %s1928_s28, 4  ;;  %s78_s30 = sshll.u32 %s1929_s0, 4  ;;  %s68_s29 = int_to_ptr.vmem [resolvable:$true] %s67_s29  ;;  %s79_s30 = int_to_ptr.vmem [resolvable:$true] %s78_s30 }
  0x34   :  { %s1847_s14 = scalar_lea.hbm %s2544_s7, 16 }
  0x35   :  { %p1848_p7 = scmp.ne.s32.totalorder %s2544_s7, %s1847_s14  ;;  %p1851_p8 = scmp.lt.u32.totalorder %s1847_s14, %s2544_s7 }
  0x37   :  { %p1853_p9 = pnand %p1851_p8, %p1848_p7 }
  0x39   :  { %1856 = shalt.err (!%p1853_p9)
}
  0x3a   :  { %s1857_s4 = scalar_lea.vmem %s68_s29, 16  ;;  %s1861_s16 = scalar_lea.vmem %s68_s29, 32 }
  0x3b   :  { %p1858_p10 = scmp.ne.s32.totalorder %s68_s29, %s1857_s4  ;;  %p1862_p11 = scmp.lt.s32.totalorder %s68_s29, %s68_s29 }
  0x3c   :  { %p1863_p12 = scmp.lt.s32.totalorder %s1861_s16, %s1857_s4 }
  0x3e   :  { %p1864_p13 = por %p1863_p12, %p1862_p11 }
  0x40   :  { %p1865_p0 = pnand %p1864_p13, %p1858_p10 }
  0x42   :  { %1868 = shalt.err (!%p1865_p0)
}
  0x43   :  { %70 = dma.hbm_to_vmem [thread:$0]  %s2544_s7, 16, %s68_s29, [#allocation11]  }
  0x44   :  { %s1869_s24 = scalar_lea.hbm %s2546_s9, 2048 }
  0x45   :  { %p1870_p1 = scmp.ne.s32.totalorder %s2546_s9, %s1869_s24  ;;  %p1873_p2 = scmp.lt.u32.totalorder %s1869_s24, %s2546_s9 }
  0x47   :  { %p1875_p3 = pnand %p1873_p2, %p1870_p1 }
  0x49   :  { %1878 = shalt.err (!%p1875_p3)
}
  0x4a   :  { %s1879_s12 = scalar_lea.vmem %s79_s30, 2048  ;;  %p1884_p5 = scmp.lt.s32.totalorder %s79_s30, %s79_s30 }
  0x4b   :  { %p1880_p4 = scmp.ne.s32.totalorder %s79_s30, %s1879_s12  ;;  %p1885_p6 = scmp.lt.s32.totalorder %s1879_s12, %s1879_s12 }
  0x4d   :  { %p1886_p7 = por %p1885_p6, %p1884_p5 }
  0x4f   :  { %p1887_p8 = pnand %p1886_p7, %p1880_p4 }
  0x51   :  { %1890 = shalt.err (!%p1887_p8)
}
  0x52   :  { %s1930_s7 = smov 128   ;;  %s1931_s29 = smov 8  }
  0x53   :  { %84 = dma.hbm_to_vmem [thread:$0]  %s2546_s9, 2048, %s79_s30, [#allocation14], %s1930_s7, %s1930_s7, %s1931_s29  }
  0x54   :  { %1913 = dma.done.wait [#allocation8], 16  }
  0x55   :  { %1914 = vsyncadd [#allocation8], 4294967280 }
  0x56   :  { %1915 = dma.done.wait [#allocation6], 1024  }
  0x57   :  { %1916 = vsyncadd [#allocation6], 4294966272 }
  0x58   :  { %1917 = dma.done.wait [#allocation11], 32  }
  0x59   :  { %1918 = vsyncadd [#allocation11], 4294967264 }
  0x5a   :  { %1919 = dma.done.wait [#allocation14], 2048  }
  0x5b   :  { %1920 = vsyncadd [#allocation14], 4294965248 }
  0x5c   :  { %102 = sfence }
  0x5d   :  { %v1766_v0 = vld [vmem:[#allocation9] sm:$0xff]   ;;  %v1932_v1 = vmov 0.0   ;;  %v1767_v2 = vld [vmem:[#allocation9 + $0x8] sm:$0xff]   ;;  %vm1933_vm0 = vmmov 0   ;;  %v1934_v3 = vmov 1   ;;  %v1768_v4 = vld [vmem:[#allocation9 + $0x10] sm:$0xff]  }
  0x5e   :  { %1441 = vmatprep.subr.bf16.mxu0 %v1932_v1  ;;  %1457 = vmatprep.mubr.msk.bf16.mxu0 %vm1933_vm0, %v1932_v1  ;;  %v1935_v5 = vmov 0   ;;  %v514_v6 = vld [vmem:[%s2539_s2] sm:$0xff]  ;;  %v1769_v7 = vld [vmem:[#allocation9 + $0x18] sm:$0xff]   ;;  %v515_v8 = vld [vmem:[%s2539_s2 + $0x8] sm:$0xff]  ;;  %v1936_v11 = vmov 2   ;;  %v1937_v13 = vmov 3  }
  0x5f   :  { %1442 = vmatpush3.bf16.msra.mxu0 %v1766_v0  ;;  %1747 = vset.pattern.permute.xlu1 %v1934_v3  ;;  %1198 = vst [vmem:[#allocation15] sm:$0xf] %v1935_v5  ;;  %1199 = vst [vmem:[#allocation15 + $0x4] sm:$0xf] %v1935_v5  ;;  %v1770_v9 = vld [vmem:[#allocation9 + $0x20] sm:$0xff]   ;;  %v1771_v10 = vld [vmem:[#allocation9 + $0x28] sm:$0xff]  }
  0x60   :  { %1443 = vmatprep.subr.bf16.mxu0 %v1932_v1  ;;  %1746 = vset.pattern.permute.xlu0 %v1935_v5  ;;  %v1772_v12 = vld [vmem:[#allocation9 + $0x30] sm:$0xff]   ;;  %v1773_v14 = vld [vmem:[#allocation9 + $0x38] sm:$0xff]   ;;  %v2071_v15 = vld [vmem:[%s2539_s2 + $0x20] sm:$0xff]  ;;  %s2219_s23 = sld [smem:[#allocation5 + $0x8]]  ;;  %s2221_s5 = sld [smem:[#allocation5 + $0x9]]  ;;  %vm1208_vm9 = vcmask 257024  }
  0x61   :  { %543 = vperm.xlu1 %1747, %v514_v6   ;;  %519 = vperm.xlu0 %1746, %v514_v6   ;;  %v1774_v16 = vld [vmem:[%s2538_s1] sm:$0xff]   ;;  %v1349_v17 = vld [vmem:[%s2539_s2 + $0x28] sm:$0xff]  ;;  %v2084_v18 = vld [vmem:[%s2539_s2 + $0x10] sm:$0xff]  ;;  %s2223_s21 = sld [smem:[#allocation5 + $0xa]]  ;;  %s2225_s1 = sld [smem:[#allocation5 + $0xb]] }
  0x62   :  { %v422_v19 = vld [vmem:[%s2545_s8] sm:$0xff]  ;;  %v423_v20 = vld [vmem:[%s2545_s8 + $0x8] sm:$0xff]  ;;  %v1342_v22 = vld [vmem:[%s2539_s2 + $0x18] sm:$0xff]  ;;  %s2229_s24 = sld [smem:[#allocation5 + $0xc]]  ;;  %s2233_s26 = sld [smem:[#allocation5 + $0xe]] }
  0x63   :  { %1444 = vmatpush3.bf16.msra.mxu0 %v1767_v2  ;;  %v1601_v21 = vpack.c.bf16 %v423_v20, %v422_v19  ;;  %v424_v23 = vld [vmem:[%s2545_s8 + $0x10] sm:$0xff]  ;;  %v425_v24 = vld [vmem:[%s2545_s8 + $0x18] sm:$0xff]  ;;  %v426_v26 = vld [vmem:[%s2545_s8 + $0x20] sm:$0xff]  ;;  %s2235_s27 = sld [smem:[#allocation5 + $0xf]]  ;;  %s2241_s28 = sld [smem:[#allocation5 + $0x28]] }
  0x64   :  { %1445 = vmatprep.subr.bf16.mxu0 %v1932_v1  ;;  %v1605_v25 = vpack.c.bf16 %v425_v24, %v424_v23  ;;  %v427_v27 = vld [vmem:[%s2545_s8 + $0x28] sm:$0xff]  ;;  %v428_v32 = vld [vmem:[%s2545_s8 + $0x30] sm:$0xff]  ;;  %v429_v33 = vld [vmem:[%s2545_s8 + $0x38] sm:$0xff]  ;;  %s2243_s0 = sld [smem:[#allocation5 + $0x29]]  ;;  %s2245_s12 = sld [smem:[#allocation5 + $0x2a]] }
  0x65   :  { %547 = vperm.xlu1 %1747, %v515_v8   ;;  %524 = vperm.xlu0 %1746, %v515_v8   ;;  %v1609_v28 = vpack.c.bf16 %v427_v27, %v426_v26  ;;  %v598_v29 = vld [vmem:[#allocation13] sm:$0xff]  ;;  %v599_v30 = vld [vmem:[#allocation13 + $0x8] sm:$0xff]  ;;  %v1613_v34 = vpack.c.bf16 %v429_v33, %v428_v32  ;;  %v600_v35 = vld [vmem:[#allocation13 + $0x10] sm:$0xff]  ;;  %s2247_s7 = sld [smem:[#allocation5 + $0x2b]]  ;;  %s2249_s29 = sld [smem:[#allocation5 + $0x2c]] }
  0x66   :  { %1602 = vmatprep.subr.bf16.mxu1 %v1601_v21  ;;  %v2116_v31 = vpack.c.bf16 %v599_v30, %v598_v29  ;;  %v601_v36 = vld [vmem:[#allocation13 + $0x18] sm:$0xff]  ;;  %v431_v39 = vld [vmem:[%s2545_s8 + $0x48] sm:$0xff]  ;;  %v432_v44 = vld [vmem:[%s2545_s8 + $0x50] sm:$0xff]  ;;  %s2251_s13 = sld [smem:[#allocation5 + $0x2d]]  ;;  %s2255_s2 = sld [smem:[#allocation5 + $0x2f]] }
  0x67   :  { %1446 = vmatpush3.bf16.msra.mxu0 %v1768_v4  ;;  %1604 = vmatpush3.bf16.msra.mxu1 %v1601_v21  ;;  %v2127_v37 = vpack.c.bf16 %v601_v36, %v600_v35  ;;  %v430_v38 = vld [vmem:[%s2545_s8 + $0x40] sm:$0xff]  ;;  %v603_v42 = vld [vmem:[#allocation13 + $0x28] sm:$0xff]  ;;  %v433_v45 = vld [vmem:[%s2545_s8 + $0x58] sm:$0xff]  ;;  %s2257_s14 = sld [smem:[#allocation5 + $0x18]]  ;;  %s2259_s9 = sld [smem:[#allocation5 + $0x19]] }
  0x68   :  { %1447 = vmatprep.subr.bf16.mxu0 %v1932_v1  ;;  %1606 = vmatprep.subr.bf16.mxu1 %v1605_v25  ;;  %v602_v40 = vld [vmem:[#allocation13 + $0x20] sm:$0xff]  ;;  %v1617_v41 = vpack.c.bf16 %v431_v39, %v430_v38  ;;  %v1621_v46 = vpack.c.bf16 %v433_v45, %v432_v44  ;;  %v436_v50 = vld [vmem:[%s2545_s8 + $0x70] sm:$0xff]  ;;  %v437_v51 = vld [vmem:[%s2545_s8 + $0x78] sm:$0xff]  ;;  %s2261_s30 = sld [smem:[#allocation5 + $0x1a]]  ;;  %s2263_s15 = sld [smem:[#allocation5 + $0x1b]] }
  0x69   :  { %1749 = vset.pattern.permute.xlu1 %v1936_v11  ;;  %1748 = vset.pattern.permute.xlu0 %v1936_v11  ;;  %v2141_v43 = vpack.c.bf16 %v603_v42, %v602_v40  ;;  %v434_v47 = vld [vmem:[%s2545_s8 + $0x60] sm:$0xff]  ;;  %v435_v48 = vld [vmem:[%s2545_s8 + $0x68] sm:$0xff]  ;;  %v1629_v52 = vpack.c.bf16 %v437_v51, %v436_v50  ;;  %v604_v53 = vld [vmem:[#allocation13 + $0x30] sm:$0xff]  ;;  %s2253_s8 = sld [smem:[#allocation5 + $0x2e]]  ;;  %s2269_s17 = sld [smem:[#allocation5 + $0x1c]] }
  0x6a   :  { %564 = vperm.xlu1 %1749, %v515_v8   ;;  %560 = vperm.xlu0 %1748, %v514_v6   ;;  %v1625_v49 = vpack.c.bf16 %v435_v48, %v434_v47  ;;  %v605_v54 = vld [vmem:[#allocation13 + $0x38] sm:$0xff]  ;;  %v606_v56 = vld [vmem:[#allocation13 + $0x40] sm:$0xff]  ;;  %v607_v57 = vld [vmem:[#allocation13 + $0x48] sm:$0xff]  ;;  %s2271_s18 = sld [smem:[#allocation5 + $0x1d]]  ;;  %s2273_s20 = sld [smem:[#allocation5 + $0x1e]] }
  0x6b   :  { %1448 = vmatpush3.bf16.msra.mxu0 %v1769_v7  ;;  %1608 = vmatpush3.bf16.msra.mxu1 %v1605_v25  ;;  %v2169_v55 = vpack.c.bf16 %v605_v54, %v604_v53  ;;  %v2174_v58 = vpack.c.bf16 %v607_v57, %v606_v56  ;;  %v608_v59 = vld [vmem:[#allocation13 + $0x50] sm:$0xff]  ;;  %v609_v60 = vld [vmem:[#allocation13 + $0x58] sm:$0xff]  ;;  %v610_v62 = vld [vmem:[#allocation13 + $0x60] sm:$0xff]  ;;  %s2275_s4 = sld [smem:[#allocation5 + $0x1f]]  ;;  %s2277_s16 = sld [smem:[#allocation5]] }
  0x6c   :  { %1449 = vmatprep.subr.bf16.mxu0 %v1932_v1  ;;  %1610 = vmatprep.subr.bf16.mxu1 %v1609_v28  ;;  %v2178_v61 = vpack.c.bf16 %v609_v60, %v608_v59  ;;  %v611_v63 = vld [vmem:[#allocation13 + $0x68] sm:$0xff]  ;;  %v613_v2 = vld [vmem:[#allocation13 + $0x78] sm:$0xff]  ;;  %s2279_s22 = sld [smem:[#allocation5 + $0x1]]  ;;  %s2281_s19 = sld [smem:[#allocation5 + $0x2]] }
  0x6d   :  { %v2182_v0 = vpack.c.bf16 %v611_v63, %v610_v62  ;;  %s2283_s25 = sld [smem:[#allocation5 + $0x3]]  ;;  %s2289_s11 = sld [smem:[#allocation5 + $0x4]]  ;;  %v1279_v26 = vld [vmem:[#allocation10] ss:$0 sm:$0xff]  ;;  %v2344_v42 = vld [vmem:[#allocation12] ss:$0 sm:$0xff] }
  0x6e   :  { %1750 = vset.pattern.permute.xlu1 %v1937_v13  ;;  %1751 = vset.pattern.permute.xlu0 %v1937_v13  ;;  %s2291_s10 = sld [smem:[#allocation5 + $0x5]]  ;;  %v2330_v33 = vld [vmem:[%s2543_s6] ss:$0 sm:$0xff]  ;;  %v2357_v48 = vld [vmem:[%s2543_s6 + $0x2] ss:$0 sm:$0xff] }
  0x6f   :  { %1450 = vmatpush3.bf16.msra.mxu0 %v1770_v9  ;;  %577 = vperm.xlu1 %1750, %v514_v6   ;;  %v1103_v6 = vld [vmem:[%s2540_s3] sm:$0xff]  ;;  %v1106_v9 = vld [vmem:[%s2540_s3 + $0x18] sm:$0xff] }
  0x70   :  { %1451 = vmatprep.subr.bf16.mxu0 %v1932_v1  ;;  %581 = vperm.xlu0 %1751, %v515_v8   ;;  %v1105_v8 = vld [vmem:[%s2540_s3 + $0x10] sm:$0xff]  ;;  %2554 = sst [smem:[#allocation21_spill]] %s2271_s18  ;;  %s2293_s18 = sld [smem:[#allocation5 + $0x6]]  ;;  %v2372_v51 = vld [vmem:[%s2543_s6 + $0x3] ss:$0 sm:$0xff] }
  0x71   :  { %1612 = vmatpush3.bf16.msra.mxu1 %v1609_v28  ;;  %2555 = sst [smem:[#allocation22_spill]] %s2273_s20  ;;  %s2295_s20 = sld [smem:[#allocation5 + $0x7]] }
  0x72   :  { %1614 = vmatprep.subr.bf16.mxu1 %v1613_v34  ;;  %2556 = sst [smem:[#allocation23_spill]] %s2277_s16  ;;  %s2307_s16 = sld [smem:[#allocation5 + $0x13]] }
  0x73   :  { %1452 = vmatpush3.bf16.msra.mxu0 %v1771_v10  ;;  %1752 = vset.pattern.permute.xlu1 %v1935_v5  ;;  %v1107_v10 = vld [vmem:[%s2540_s3 + $0x20] sm:$0xff]  ;;  %2557 = sst [smem:[#allocation24_spill]] %s2279_s22  ;;  %s2301_s22 = sld [smem:[#allocation5 + $0x10]] }
  0x74   :  { %1453 = vmatprep.subr.bf16.mxu0 %v1932_v1  ;;  %882 = vperm.xlu1 %1752, %v2071_v15   ;;  %2558 = sst [smem:[#allocation25_spill]] %s2281_s19  ;;  %s2303_s19 = sld [smem:[#allocation5 + $0x11]] }
  0x75   :  { %1753 = vset.pattern.permute.xlu0 %v1935_v5  ;;  %1616 = vmatpush3.bf16.msra.mxu1 %v1613_v34  ;;  %2559 = sst [smem:[#allocation26_spill]] %s2283_s25  ;;  %s2305_s25 = sld [smem:[#allocation5 + $0x12]] }
  0x76   :  { %700 = vperm.xlu0 %1753, %v2084_v18   ;;  %1618 = vmatprep.subr.bf16.mxu1 %v1617_v41  ;;  %2560 = sst [smem:[#allocation27_spill]] %s2289_s11  ;;  %s2309_s11 = sld [smem:[#allocation5 + $0x14]] }
  0x77   :  { %1454 = vmatpush3.bf16.msra.mxu0 %v1772_v12  ;;  %2561 = sst [smem:[#allocation28_spill]] %s2291_s10  ;;  %s2311_s10 = sld [smem:[#allocation5 + $0x15]] }
  0x78   :  { %1455 = vmatprep.subr.bf16.mxu0 %v1932_v1  ;;  %887 = vperm.xlu1 %1752, %v1349_v17   ;;  %v612_v1 = vld [vmem:[#allocation13 + $0x70] sm:$0xff]  ;;  %2562 = sst [smem:[#allocation29_spill]] %s2293_s18  ;;  %s2317_s18 = sld [smem:[#allocation5 + $0x17]] }
  0x79   :  { %1620 = vmatpush3.bf16.msra.mxu1 %v1617_v41  ;;  %2563 = sst [smem:[#allocation30_spill]] %s2295_s20  ;;  %s2315_s20 = sld [smem:[#allocation5 + $0x16]]  ;;  %v2342_v41 = vld [vmem:[%s2543_s6 + $0x1] ss:$0 sm:$0xff] }
  0x7a   :  { %1756 = vset.pattern.permute.xlu0 %v1934_v3  ;;  %1622 = vmatprep.subr.bf16.mxu1 %v1621_v46  ;;  %2564 = sst [smem:[#allocation31_spill]] %s2301_s22  ;;  %s2319_s22 = sld [smem:[#allocation5 + $0x20]] }
  0x7b   :  { %1456 = vmatpush3.bf16.msra.mxu0 %v1773_v14  ;;  %910 = vperm.xlu0 %1756, %v1349_v17   ;;  %2565 = sst [smem:[#allocation32_spill]] %s2303_s19  ;;  %s2321_s19 = sld [smem:[#allocation5 + $0x21]] }
  0x7c   :  { %1754 = vset.pattern.permute.xlu1 %v1934_v3  ;;  %1634 = vmatprep.subr.bf16.mxu0 %v2116_v31  ;;  %2566 = sst [smem:[#allocation33_spill]] %s2305_s25  ;;  %s2325_s25 = sld [smem:[#allocation5 + $0x23]] }
  0x7d   :  { %906 = vperm.xlu1 %1754, %v2071_v15   ;;  %1624 = vmatpush3.bf16.msra.mxu1 %v1621_v46  ;;  %2567 = sst [smem:[#allocation34_spill]] %s2307_s16  ;;  %s2323_s16 = sld [smem:[#allocation5 + $0x22]] }
  0x7e   :  { %1458 = vmatmul.mubr.bf16.vlgmr.msra.gmra.mrb[0].mxu0 %v1774_v16  ;;  %1626 = vmatprep.subr.bf16.mxu1 %v1625_v49  ;;  %2568 = sst [smem:[#allocation35_spill]] %s2309_s11  ;;  %s259_s11 = scalar_lea.vmem [#allocation2], %s2219_s23 }
  0x7f   :  { %728 = vperm.xlu0 %1756, %v1342_v22   ;;  %1636 = vmatpush3.bf16.msra.mxu0 %v2116_v31  ;;  %2569 = sst [smem:[#allocation36_spill]] %s2311_s10  ;;  %s2360_s10 = sld [smem:[#allocation5 + $0x26]] }
  0x80   :  { %1638 = vmatprep.subr.bf16.mxu0 %v2127_v37  ;;  %2570 = sst [smem:[#allocation37_spill]] %s2317_s18  ;;  %s2332_s18 = sld [smem:[#allocation5 + $0x24]] }
  0x81   :  { %1755 = vset.pattern.permute.xlu1 %v1935_v5  ;;  %1628 = vmatpush3.bf16.msra.mxu1 %v1625_v49  ;;  %2571 = sst [smem:[#allocation38_spill]] %s2319_s22  ;;  %s2334_s22 = sld [smem:[#allocation5 + $0x25]] }
  0x82   :  { %705 = vperm.xlu1 %1755, %v1342_v22   ;;  %1630 = vmatprep.subr.bf16.mxu1 %v1629_v52  ;;  %2573 = sst [smem:[#allocation40_spill]] %s2325_s25  ;;  %s263_s25 = scalar_lea.vmem [#allocation2], %s2221_s5 }
  0x83   :  { %1759 = vset.pattern.permute.xlu0 %v1936_v11  ;;  %1640 = vmatpush3.bf16.msra.mxu0 %v2127_v37  ;;  %2572 = sst [smem:[#allocation39_spill]] %s2323_s16  ;;  %s271_s6 = scalar_lea.vmem [#allocation2], %s2225_s1 }
  0x84   :  { %741 = vperm.xlu0 %1759, %v2084_v18   ;;  %1642 = vmatprep.subr.bf16.mxu0 %v2141_v43  ;;  %s283_s5 = scalar_lea.vmem [#allocation2], %s2233_s26  ;;  %s389_s1 = scalar_lea.vmem [#allocation2], %s2241_s28 }
  0x85   :  { %1632 = vmatpush3.bf16.msra.mxu1 %v1629_v52  ;;  %s401_s26 = scalar_lea.vmem [#allocation2], %s2247_s7  ;;  %s409_s28 = scalar_lea.vmem [#allocation2], %s2251_s13 }
  0x86   :  { %1757 = vset.pattern.permute.xlu1 %v1934_v3  ;;  %1666 = vmatprep.subr.bf16.mxu1 %v2116_v31  ;;  %v2186_v3 = vpack.c.bf16 %v613_v2, %v612_v1  ;;  %2574 = sst [smem:[#allocation41_spill]] %s2332_s18  ;;  %s275_s18 = scalar_lea.vmem [#allocation2], %s2229_s24 }
  0x87   :  { %724 = vperm.xlu1 %1757, %v2084_v18   ;;  %1644 = vmatpush3.bf16.msra.mxu0 %v2141_v43  ;;  %2575 = sst [smem:[#allocation42_spill]] %s2334_s22  ;;  %s2362_s22 = sld [smem:[#allocation5 + $0x27]] }
  0x88   :  { %1762 = vset.pattern.permute.xlu0 %v1937_v13  ;;  %1646 = vmatprep.subr.bf16.mxu0 %v2169_v55  ;;  %s393_s24 = scalar_lea.vmem [#allocation2], %s2243_s0  ;;  %s413_s0 = scalar_lea.vmem [#allocation2], %s2253_s8 }
  0x89   :  { %944 = vperm.xlu0 %1762, %v1349_v17   ;;  %s324_s7 = scalar_lea.vmem [#allocation2], %s2257_s14  ;;  %s2577_s13 = sld [smem:[#allocation21_spill]] }
  0x8a   :  { %s2578_s8 = sld [smem:[#allocation22_spill]]  ;;  %s332_s16 = scalar_lea.vmem [#allocation2], %s2261_s30 }
  0x8b   :  { %1758 = vset.pattern.permute.xlu1 %v1936_v11  ;;  %1648 = vmatpush3.bf16.msra.mxu0 %v2169_v55  ;;  %s2579_s14 = sld [smem:[#allocation23_spill]]  ;;  %s352_s30 = scalar_lea.vmem [#allocation2], %s2275_s4 }
  0x8c   :  { %923 = vperm.xlu1 %1758, %v2071_v15   ;;  %1650 = vmatprep.subr.bf16.mxu0 %v2174_v58 }
  0x8d   :  { %1764 = vset.pattern.permute.xlu0 %v1935_v5  ;;  %2576 = sst [smem:[#allocation43_spill]] %s2362_s22  ;;  %s267_s22 = scalar_lea.vmem [#allocation2], %s2223_s21 }
  0x8e   :  { %1111 = vperm.xlu0 %1764, %v1103_v6   ;;  %s287_s21 = scalar_lea.vmem [#allocation2], %s2235_s27  ;;  %s405_s27 = scalar_lea.vmem [#allocation2], %s2249_s29 }
  0x8f   :  { %1652 = vmatpush3.bf16.msra.mxu0 %v2174_v58  ;;  %s328_s29 = scalar_lea.vmem [#allocation2], %s2259_s9  ;;  %s344_s9 = scalar_lea.vmem [#allocation2], %s2577_s13 }
  0x90   :  { %927 = vperm.xlu1 %1758, %v1349_v17   ;;  %1654 = vmatprep.subr.bf16.mxu0 %v2178_v61  ;;  %s2591_s13 = sld [smem:[#allocation35_spill]] }
  0x92   :  { %1126 = vperm.xlu0 %1764, %v1106_v9  }
  0x93   :  { %1656 = vmatpush3.bf16.msra.mxu0 %v2178_v61 }
  0x94   :  { %1760 = vset.pattern.permute.xlu1 %v1937_v13  ;;  %1658 = vmatprep.subr.bf16.mxu0 %v2182_v0 }
  0x95   :  { %940 = vperm.xlu1 %1760, %v2071_v15  }
  0x97   :  { %1660 = vmatpush3.bf16.msra.mxu0 %v2182_v0 }
  0x98   :  { %1662 = vmatprep.subr.bf16.mxu0 %v2186_v3 }
  0x99   :  { %1761 = vset.pattern.permute.xlu1 %v1936_v11  ;;  %v1108_v11 = vld [vmem:[%s2540_s3 + $0x28] sm:$0xff] }
  0x9a   :  { %745 = vperm.xlu1 %1761, %v1342_v22   ;;  %1136 = vperm.xlu0 %1764, %v1108_v11  }
  0x9b   :  { %1664 = vmatpush3.bf16.msra.mxu0 %v2186_v3 }
  0x9c   :  { %1698 = vmatprep.subr.bf16.mxu0 %v2116_v31 }
  0x9e   :  { %1763 = vset.pattern.permute.xlu1 %v1937_v13 }
  0x9f   :  { %758 = vperm.xlu1 %1763, %v2084_v18  }
  0xa3   :  { %762 = vperm.xlu1 %1763, %v1342_v22  }
  0xa7   :  { %1765 = vset.pattern.permute.xlu1 %v1935_v5  ;;  %v1104_v5 = vld [vmem:[%s2540_s3 + $0x8] sm:$0xff]  ;;  %s2231_s3 = sld [smem:[#allocation5 + $0xd]] }
  0xa8   :  { %1116 = vperm.xlu1 %1765, %v1104_v5  }
  0xac   :  { %1121 = vperm.xlu1 %1765, %v1105_v8  }
  0xad   :  { %s279_s23 = scalar_lea.vmem [#allocation2], %s2231_s3  ;;  %s397_s3 = scalar_lea.vmem [#allocation2], %s2245_s12 }
  0xae   :  { %s417_s12 = scalar_lea.vmem [#allocation2], %s2255_s2  ;;  %s336_s2 = scalar_lea.vmem [#allocation2], %s2263_s15 }
  0xaf   :  { %s2582_s15 = sld [smem:[#allocation26_spill]] }
  0xb0   :  { %1131 = vperm.xlu1 %1765, %v1107_v10  }
  0xe0   :  { %v2191_v4 = vpop.permute.xlu1 %543  ;;  %v2237_v16 = vpop.permute.xlu0 %519 }
  0xe1   :  { %v531_v63 = vmul.f32 %v2330_v33, %v2237_v16 }
  0xe4   :  { %v2199_v7 = vpop.permute.xlu1 %547  ;;  %v525_v18 = vpop.permute.xlu0 %524 }
  0xe5   :  { %v532_v38 = vmul.f32 %v2330_v33, %v525_v18  ;;  %v555_v46 = vmul.f32 %v2342_v41, %v2199_v7 }
  0xe7   :  { %v540_v47 = vadd.f32 %v2344_v42, %v532_v38 }
  0xe9   :  { %v2213_v12 = vpop.permute.xlu1 %564  ;;  %v2265_v20 = vpop.permute.xlu0 %560  ;;  %v557_v1 = vadd.f32 %v555_v46, %v540_v47 }
  0xea   :  { %v572_v62 = vmul.f32 %v2357_v48, %v2213_v12 }
  0xee   :  { %v2215_v13 = vpop.permute.xlu1 %577 }
  0xef   :  { %v2285_v22 = vpop.permute.xlu0 %581 }
  0xf3   :  { %v2217_v14 = vpop.permute.xlu1 %882 }
  0xf4   :  { %v894_v47 = vmul.f32 %v2330_v33, %v2217_v14 }
  0xf5   :  { %v2297_v24 = vpop.permute.xlu0 %700 }
  0xf6   :  { %v712_v7 = vmul.f32 %v2330_v33, %v2297_v24 }
  0xf7   :  { %v2227_v15 = vpop.permute.xlu1 %887 }
  0xf8   :  { %v895_v44 = vmul.f32 %v2330_v33, %v2227_v15 }
  0xfa   :  { %v911_v27 = vpop.permute.xlu0 %910  ;;  %v903_v52 = vadd.f32 %v2344_v42, %v895_v44 }
  0xfb   :  { %v918_v54 = vmul.f32 %v2342_v41, %v911_v27 }
  0xfc   :  { %v2239_v17 = vpop.permute.xlu1 %906 }
  0xfd   :  { %v920_v16 = vadd.f32 %v918_v54, %v903_v52 }
  0xfe   :  { %v729_v39 = vpop.permute.xlu0 %728 }
  0xff   :  { %v736_v56 = vmul.f32 %v2342_v41, %v729_v39 }
 0x101   :  { %v706_v19 = vpop.permute.xlu1 %705 }
 0x102   :  { %v713_v45 = vmul.f32 %v2330_v33, %v706_v19 }
 0x103   :  { %v2364_v49 = vpop.permute.xlu0 %741 }
 0x104   :  { %v721_v53 = vadd.f32 %v2344_v42, %v713_v45 }
 0x106   :  { %v2267_v21 = vpop.permute.xlu1 %724  ;;  %v738_v19 = vadd.f32 %v736_v56, %v721_v53 }
 0x10b   :  { %v2287_v23 = vpop.permute.xlu1 %923 }
 0x10f   :  { %v2299_v25 = vpop.permute.xlu1 %927 }
 0x110   :  { %v935_v18 = vmul.f32 %v2357_v48, %v2299_v25  ;;  %v539_v25 = vadd.f32 %v2344_v42, %v531_v63  ;;  %v571_v63 = vmul.f32 %v2357_v48, %v2265_v20 }
 0x112   :  { %v937_v54 = vadd.f32 %v935_v18, %v920_v16 }
 0x114   :  { %v2313_v28 = vpop.permute.xlu1 %940 }
 0x119   :  { %v2337_v40 = vpop.permute.xlu1 %745 }
 0x11a   :  { %v753_v24 = vmul.f32 %v2357_v48, %v2337_v40  ;;  %v735_v40 = vmul.f32 %v2342_v41, %v2267_v21 }
 0x11c   :  { %v755_v56 = vadd.f32 %v753_v24, %v738_v19 }
 0x11e   :  { %v2366_v50 = vpop.permute.xlu1 %758 }
 0x122   :  { %v763_v38 = vpop.permute.xlu1 %762 }
 0x123   :  { %v770_v14 = vmul.f32 %v2372_v51, %v763_v38 }
 0x151   :  { %v217_v29 = vpop.f32.mrb[0].mxu0 }
 0x152   :  { %v218_v30 = vadd.f32 %v1279_v26, %v217_v29  ;;  %v1459_v32 = vpop.f32.mrb[1].mxu0 }
 0x153   :  { %v220_v34 = vpop.f32.mrb[2].mxu0  ;;  %v574_v32 = vadd.f32 %v572_v62, %v557_v1 }
 0x154   :  { %224 = vst [vmem:[#allocation2] sm:$0xff] %v218_v30  ;;  %v221_v35 = vadd.f32 %v1279_v26, %v220_v34  ;;  %v1460_v36 = vpop.f32.mrb[3].mxu0  ;;  %1493 = vmatprep.mubr.f32.mxu1 %v218_v30  ;;  %v554_v30 = vmul.f32 %v2342_v41, %v2191_v4  ;;  %v589_v34 = vmul.f32 %v2372_v51, %v2285_v22 }
 0x155   :  { %v720_v22 = vadd.f32 %v2344_v42, %v712_v7 }
 0x156   :  { %225 = vst [vmem:[#allocation2 + $0x8] sm:$0xff] %v221_v35  ;;  %1494 = vmatmul.mubr.f32.vlgmr.msra.gmra.mrb[0].mxu1 %v221_v35  ;;  %v945_v35 = vpop.permute.xlu0 %944  ;;  %v556_v62 = vadd.f32 %v554_v30, %v539_v25  ;;  %v591_v1 = vadd.f32 %v589_v34, %v574_v32 }
 0x157   :  { %1668 = vmatpush3.bf16.msra.mxu1 %v2116_v31 }
 0x158   :  { %1670 = vmatprep.subr.bf16.mxu1 %v2127_v37 }
 0x15b   :  { %1672 = vmatpush3.bf16.msra.mxu1 %v2127_v37 }
 0x15c   :  { %1674 = vmatprep.subr.bf16.mxu1 %v2141_v43 }
 0x15d   :  { %v260_v57 = vld [vmem:[%s259_s11] sm:$0x1]  ;;  %s2580_s11 = sld [smem:[#allocation24_spill]] }
 0x15e   :  { %v264_v59 = vld [vmem:[%s263_s25] sm:$0x1]  ;;  %261 = vst [vmem:[#allocation3 + $0x8] sm:$0x1] %v260_v57  ;;  %s348_s25 = scalar_lea.vmem [#allocation2], %s2578_s8  ;;  %v952_v57 = vmul.f32 %v2372_v51, %v945_v35 }
 0x15f   :  { %v268_v60 = vld [vmem:[%s267_s22] sm:$0x1]  ;;  %265 = vst [vmem:[#allocation3 + $0x9] sm:$0x1] %v264_v59  ;;  %1676 = vmatpush3.bf16.msra.mxu1 %v2141_v43  ;;  %s340_s22 = scalar_lea.vmem [#allocation2], %s2269_s17  ;;  %s2583_s17 = sld [smem:[#allocation27_spill]] }
 0x160   :  { %v272_v2 = vld [vmem:[%s271_s6] sm:$0x1]  ;;  %269 = vst [vmem:[#allocation3 + $0xa] sm:$0x1] %v268_v60  ;;  %1678 = vmatprep.subr.bf16.mxu1 %v2169_v55  ;;  %s2581_s6 = sld [smem:[#allocation25_spill]]  ;;  %v954_v19 = vadd.f32 %v952_v57, %v937_v54 }
 0x161   :  { %v276_v5 = vld [vmem:[%s275_s18] sm:$0x1]  ;;  %273 = vst [vmem:[#allocation3 + $0xb] sm:$0x1] %v272_v2  ;;  %s227_s18 = scalar_lea.vmem [#allocation2], %s2579_s14  ;;  %s2593_s14 = sld [smem:[#allocation37_spill]] }
 0x162   :  { %v280_v6 = vld [vmem:[%s279_s23] sm:$0x1]  ;;  %277 = vst [vmem:[#allocation3 + $0xc] sm:$0x1] %v276_v5  ;;  %s2584_s23 = sld [smem:[#allocation28_spill]] }
 0x163   :  { %v284_v8 = vld [vmem:[%s283_s5] sm:$0x1]  ;;  %281 = vst [vmem:[#allocation3 + $0xd] sm:$0x1] %v280_v6  ;;  %1680 = vmatpush3.bf16.msra.mxu1 %v2169_v55  ;;  %s231_s5 = scalar_lea.vmem [#allocation2], %s2580_s11  ;;  %s308_s11 = scalar_lea.vmem [#allocation2], %s2591_s13 }
 0x164   :  { %v288_v9 = vld [vmem:[%s287_s21] sm:$0x1]  ;;  %285 = vst [vmem:[#allocation3 + $0xe] sm:$0x1] %v284_v8  ;;  %1682 = vmatprep.subr.bf16.mxu1 %v2174_v58  ;;  %s2585_s21 = sld [smem:[#allocation29_spill]]  ;;  %v737_v8 = vadd.f32 %v735_v40, %v720_v22 }
 0x165   :  { %v390_v10 = vld [vmem:[%s389_s1] sm:$0x1]  ;;  %289 = vst [vmem:[#allocation3 + $0xf] sm:$0x1] %v288_v9  ;;  %s2586_s1 = sld [smem:[#allocation30_spill]]  ;;  %v752_v9 = vmul.f32 %v2357_v48, %v2364_v49 }
 0x166   :  { %391 = vst [vmem:[#allocation3 + $0x28] sm:$0x1] %v390_v10  ;;  %v394_v11 = vld [vmem:[%s393_s24] sm:$0x1]  ;;  %s235_s4 = scalar_lea.vmem [#allocation2], %s2581_s6  ;;  %s239_s24 = scalar_lea.vmem [#allocation2], %s2582_s15 }
 0x167   :  { %v398_v12 = vld [vmem:[%s397_s3] sm:$0x1]  ;;  %395 = vst [vmem:[#allocation3 + $0x29] sm:$0x1] %v394_v11  ;;  %s243_s3 = scalar_lea.vmem [#allocation2], %s2583_s17  ;;  %1684 = vmatpush3.bf16.msra.mxu1 %v2174_v58  ;;  %v902_v11 = vadd.f32 %v2344_v42, %v894_v47  ;;  %v772_v42 = vadd.f32 %v770_v14, %v755_v56  ;;  %s2594_s6 = sld [smem:[#allocation38_spill]]  ;;  %v754_v32 = vadd.f32 %v752_v9, %v737_v8 }
 0x168   :  { %v402_v15 = vld [vmem:[%s401_s26] sm:$0x1]  ;;  %399 = vst [vmem:[#allocation3 + $0x2a] sm:$0x1] %v398_v12  ;;  %s247_s26 = scalar_lea.vmem [#allocation2], %s2584_s23  ;;  %v917_v12 = vmul.f32 %v2342_v41, %v2239_v17  ;;  %1686 = vmatprep.subr.bf16.mxu1 %v2178_v61  ;;  %s316_s15 = scalar_lea.vmem [#allocation2], %s2315_s20 }
 0x169   :  { %403 = vst [vmem:[#allocation3 + $0x2b] sm:$0x1] %v402_v15  ;;  %v406_v26 = vld [vmem:[%s405_s27] sm:$0x1]  ;;  %s2587_s27 = sld [smem:[#allocation31_spill]]  ;;  %s320_s17 = scalar_lea.vmem [#allocation2], %s2593_s14 }
 0x16a   :  { %v410_v27 = vld [vmem:[%s409_s28] sm:$0x1]  ;;  %407 = vst [vmem:[#allocation3 + $0x2c] sm:$0x1] %v406_v26  ;;  %s2588_s28 = sld [smem:[#allocation32_spill]]  ;;  %v588_v26 = vmul.f32 %v2372_v51, %v2215_v13  ;;  %v769_v13 = vmul.f32 %v2372_v51, %v2366_v50  ;;  %s2597_s23 = sld [smem:[#allocation41_spill]] }
 0x16b   :  { %v414_v29 = vld [vmem:[%s413_s0] sm:$0x1]  ;;  %411 = vst [vmem:[#allocation3 + $0x2d] sm:$0x1] %v410_v27  ;;  %s2589_s0 = sld [smem:[#allocation33_spill]]  ;;  %v573_v27 = vadd.f32 %v571_v63, %v556_v62  ;;  %1688 = vmatpush3.bf16.msra.mxu1 %v2178_v61  ;;  %s2598_s20 = sld [smem:[#allocation42_spill]] }
 0x16c   :  { %415 = vst [vmem:[#allocation3 + $0x2e] sm:$0x1] %v414_v29  ;;  %v418_v36 = vld [vmem:[%s417_s12] sm:$0x1]  ;;  %v593_v7 = vld [vmem:[#allocation3 + $0x8] sm:$0xff]  ;;  %s251_s12 = scalar_lea.vmem [#allocation2], %s2585_s21  ;;  %1690 = vmatprep.subr.bf16.mxu1 %v2182_v0  ;;  %v771_v47 = vadd.f32 %v769_v13, %v754_v32 }
 0x16d   :  { %v325_v39 = vld [vmem:[%s324_s7] sm:$0x1]  ;;  %419 = vst [vmem:[#allocation3 + $0x2f] sm:$0x1] %v418_v36  ;;  %s255_s7 = scalar_lea.vmem [#allocation2], %s2586_s1  ;;  %v2444_v15 = vadd.f32 %v593_v7, %v591_v1  ;;  %s2599_s1 = sld [smem:[#allocation43_spill]] }
 0x16e   :  { %v329_v4 = vld [vmem:[%s328_s29] sm:$0x1]  ;;  %326 = vst [vmem:[#allocation3 + $0x18] sm:$0x1] %v325_v39  ;;  %s2590_s29 = sld [smem:[#allocation34_spill]]  ;;  %v919_v39 = vadd.f32 %v917_v12, %v902_v11 }
 0x16f   :  { %330 = vst [vmem:[#allocation3 + $0x19] sm:$0x1] %v329_v4  ;;  %v333_v44 = vld [vmem:[%s332_s16] sm:$0x1]  ;;  %s291_s8 = scalar_lea.vmem [#allocation2], %s2587_s27  ;;  %s2592_s16 = sld [smem:[#allocation36_spill]]  ;;  %v934_v4 = vmul.f32 %v2357_v48, %v2287_v23  ;;  %1692 = vmatpush3.bf16.msra.mxu1 %v2182_v0 }
 0x170   :  { %v337_v45 = vld [vmem:[%s336_s2] sm:$0x1]  ;;  %334 = vst [vmem:[#allocation3 + $0x1a] sm:$0x1] %v333_v44  ;;  %s296_s2 = scalar_lea.vmem [#allocation2], %s2588_s28  ;;  %597 = vst [vmem:[#allocation3 + $0x8] sm:$0xff] %v2444_v15  ;;  %1694 = vmatprep.subr.bf16.mxu1 %v2186_v3 }
 0x171   :  { %v341_v46 = vld [vmem:[%s340_s22] sm:$0x1]  ;;  %338 = vst [vmem:[#allocation3 + $0x1b] sm:$0x1] %v337_v45  ;;  %s300_s22 = scalar_lea.vmem [#allocation2], %s2589_s0 }
 0x172   :  { %342 = vst [vmem:[#allocation3 + $0x1c] sm:$0x1] %v341_v46  ;;  %v345_v21 = vld [vmem:[%s344_s9] sm:$0x1]  ;;  %v590_v46 = vadd.f32 %v588_v26, %v573_v27 }
 0x173   :  { %v349_v52 = vld [vmem:[%s348_s25] sm:$0x1]  ;;  %346 = vst [vmem:[#allocation3 + $0x1d] sm:$0x1] %v345_v21  ;;  %s385_s27 = scalar_lea.vmem [#allocation2], %s2599_s1  ;;  %1696 = vmatpush3.bf16.msra.mxu1 %v2186_v3 }
 0x174   :  { %v353_v53 = vld [vmem:[%s352_s30] sm:$0x1]  ;;  %350 = vst [vmem:[#allocation3 + $0x1e] sm:$0x1] %v349_v52  ;;  %s304_s9 = scalar_lea.vmem [#allocation2], %s2590_s29  ;;  %v956_v29 = vld [vmem:[#allocation3 + $0x28] sm:$0xff]  ;;  %v936_v52 = vadd.f32 %v934_v4, %v919_v39  ;;  %v1117_v39 = vpop.permute.xlu1 %1116  ;;  %v1112_v4 = vpop.permute.xlu0 %1111 }
 0x175   :  { %354 = vst [vmem:[#allocation3 + $0x1f] sm:$0x1] %v353_v53  ;;  %v228_v33 = vld [vmem:[%s227_s18] sm:$0x1]  ;;  %s312_s25 = scalar_lea.vmem [#allocation2], %s2592_s16  ;;  %s2595_s30 = sld [smem:[#allocation39_spill]]  ;;  %v2458_v34 = vadd.f32 %v956_v29, %v954_v19  ;;  %v951_v53 = vmul.f32 %v2372_v51, %v2313_v28 }
 0x176   :  { %v232_v59 = vld [vmem:[%s231_s5] sm:$0x1]  ;;  %229 = vst [vmem:[#allocation3] sm:$0x1] %v228_v33  ;;  %s2596_s18 = sld [smem:[#allocation40_spill]]  ;;  %s356_s5 = scalar_lea.vmem [#allocation2], %s2594_s6 }
 0x177   :  { %v236_v60 = vld [vmem:[%s235_s4] sm:$0x1]  ;;  %233 = vst [vmem:[#allocation3 + $0x1] sm:$0x1] %v232_v59  ;;  %s361_s4 = scalar_lea.vmem [#allocation2], %s2321_s19  ;;  %960 = vst [vmem:[#allocation3 + $0x28] sm:$0xff] %v2458_v34  ;;  %v953_v14 = vadd.f32 %v951_v53, %v936_v52 }
 0x178   :  { %237 = vst [vmem:[#allocation3 + $0x2] sm:$0x1] %v236_v60  ;;  %v240_v2 = vld [vmem:[%s239_s24] sm:$0x1]  ;;  %s377_s19 = scalar_lea.vmem [#allocation2], %s2598_s20 }
 0x179   :  { %v244_v5 = vld [vmem:[%s243_s3] sm:$0x1]  ;;  %241 = vst [vmem:[#allocation3 + $0x3] sm:$0x1] %v240_v2  ;;  %s373_s3 = scalar_lea.vmem [#allocation2], %s2597_s23 }
 0x17a   :  { %v248_v6 = vld [vmem:[%s247_s26] sm:$0x1]  ;;  %245 = vst [vmem:[#allocation3 + $0x4] sm:$0x1] %v244_v5  ;;  %s381_s26 = scalar_lea.vmem [#allocation2], %s2360_s10  ;;  %s1938_s10 = smov 96  }
 0x17b   :  { %249 = vst [vmem:[#allocation3 + $0x5] sm:$0x1] %v248_v6  ;;  %v252_v20 = vld [vmem:[%s251_s12] sm:$0x1]  ;;  %s365_s21 = scalar_lea.vmem [#allocation2], %s2595_s30  ;;  %s2600_s12 = sld [smem:[#allocation44_spill]] }
 0x17c   :  { %v256_v10 = vld [vmem:[%s255_s7] sm:$0x1]  ;;  %253 = vst [vmem:[#allocation3 + $0x6] sm:$0x1] %v252_v20  ;;  %v774_v40 = vld [vmem:[#allocation3 + $0x18] sm:$0xff]  ;;  %s369_s24 = scalar_lea.vmem [#allocation2], %s2596_s18 }
 0x17d   :  { %257 = vst [vmem:[#allocation3 + $0x7] sm:$0x1] %v256_v10  ;;  %v292_v49 = vld [vmem:[%s291_s8] sm:$0x1]  ;;  %v2472_v44 = vadd.f32 %v774_v40, %v772_v42  ;;  %v1122_v40 = vpop.permute.xlu1 %1121  ;;  %s1939_s7 = smov [#allocation15]  }
 0x17e   :  { %v297_v16 = vld [vmem:[%s296_s2] sm:$0x1]  ;;  %294 = vst [vmem:[#allocation3 + $0x10] sm:$0x1] %v292_v49  ;;  %s1216_s29 = sshll.u32 %s1939_s7, 4  ;;  %s1217_s29 = int_to_ptr.vmem [resolvable:$true] %s1216_s29 }
 0x17f   :  { %v301_v18 = vld [vmem:[%s300_s22] sm:$0x1]  ;;  %298 = vst [vmem:[#allocation3 + $0x11] sm:$0x1] %v297_v16  ;;  %778 = vst [vmem:[#allocation3 + $0x18] sm:$0xff] %v2472_v44  ;;  %s1891_s13 = scalar_lea.vmem %s1217_s29, 128  ;;  %p1896_p10 = scmp.lt.s32.totalorder %s1217_s29, %s1217_s29 }
 0x180   :  { %302 = vst [vmem:[#allocation3 + $0x12] sm:$0x1] %v301_v18  ;;  %v305_v17 = vld [vmem:[%s304_s9] sm:$0x1]  ;;  %p1892_p9 = scmp.ne.s32.totalorder %s1217_s29, %s1891_s13  ;;  %p1897_p11 = scmp.lt.s32.totalorder %s1891_s13, %s1891_s13 }
 0x181   :  { %v309_v41 = vld [vmem:[%s308_s11] sm:$0x1]  ;;  %306 = vst [vmem:[#allocation3 + $0x13] sm:$0x1] %v305_v17  ;;  %v1132_v52 = vpop.permute.xlu1 %1131 }
 0x182   :  { %v313_v24 = vld [vmem:[%s312_s25] sm:$0x1]  ;;  %310 = vst [vmem:[#allocation3 + $0x14] sm:$0x1] %v309_v41  ;;  %p1898_p12 = por %p1897_p11, %p1896_p10 }
 0x183   :  { %314 = vst [vmem:[#allocation3 + $0x15] sm:$0x1] %v313_v24  ;;  %v317_v30 = vld [vmem:[%s316_s15] sm:$0x1] }
 0x184   :  { %v321_v25 = vld [vmem:[%s320_s17] sm:$0x1]  ;;  %318 = vst [vmem:[#allocation3 + $0x16] sm:$0x1] %v317_v30  ;;  %v592_v21 = vld [vmem:[#allocation3] sm:$0xff]  ;;  %p1899_p13 = pnand %p1898_p12, %p1892_p9 }
 0x185   :  { %322 = vst [vmem:[#allocation3 + $0x17] sm:$0x1] %v321_v25  ;;  %v357_v35 = vld [vmem:[%s356_s5] sm:$0x1]  ;;  %v2481_v54 = vadd.f32 %v592_v21, %v590_v46 }
 0x186   :  { %v362_v36 = vld [vmem:[%s361_s4] sm:$0x1]  ;;  %359 = vst [vmem:[#allocation3 + $0x20] sm:$0x1] %v357_v35 }
 0x187   :  { %v366_v38 = vld [vmem:[%s365_s21] sm:$0x1]  ;;  %363 = vst [vmem:[#allocation3 + $0x21] sm:$0x1] %v362_v36  ;;  %596 = vst [vmem:[#allocation3] sm:$0xff] %v2481_v54  ;;  %1528 = vmatprep.mubr.f32.mxu0 %v2481_v54 }
 0x188   :  { %367 = vst [vmem:[#allocation3 + $0x22] sm:$0x1] %v366_v38  ;;  %v370_v50 = vld [vmem:[%s369_s24] sm:$0x1]  ;;  %1529 = vmatmul.mubr.f32.vlgmr.msra.gmra.mrb[4].mxu0 %v2444_v15 }
 0x189   :  { %v374_v22 = vld [vmem:[%s373_s3] sm:$0x1]  ;;  %371 = vst [vmem:[#allocation3 + $0x23] sm:$0x1] %v370_v50  ;;  %1700 = vmatpush3.bf16.msra.mxu0 %v2116_v31  ;;  %v1127_v50 = vpop.permute.xlu0 %1126 }
 0x18a   :  { %375 = vst [vmem:[#allocation3 + $0x24] sm:$0x1] %v374_v22  ;;  %v378_v23 = vld [vmem:[%s377_s19] sm:$0x1]  ;;  %1702 = vmatprep.subr.bf16.mxu0 %v2127_v37 }
 0x18b   :  { %v382_v48 = vld [vmem:[%s381_s26] sm:$0x1]  ;;  %379 = vst [vmem:[#allocation3 + $0x25] sm:$0x1] %v378_v23 }
 0x18c   :  { %v386_v45 = vld [vmem:[%s385_s27] sm:$0x1]  ;;  %383 = vst [vmem:[#allocation3 + $0x26] sm:$0x1] %v382_v48 }
 0x18d   :  { %387 = vst [vmem:[#allocation3 + $0x27] sm:$0x1] %v386_v45  ;;  %v773_v56 = vld [vmem:[#allocation3 + $0x10] sm:$0xff]  ;;  %1704 = vmatpush3.bf16.msra.mxu0 %v2127_v37 }
 0x18e   :  { %v2486_v57 = vadd.f32 %v773_v56, %v771_v47  ;;  %1706 = vmatprep.subr.bf16.mxu0 %v2141_v43 }
 0x190   :  { %777 = vst [vmem:[#allocation3 + $0x10] sm:$0xff] %v2486_v57  ;;  %1563 = vmatprep.mubr.f32.mxu1 %v2486_v57 }
 0x191   :  { %1564 = vmatmul.mubr.f32.vlgmr.msra.gmra.mrb[2].mxu1 %v2472_v44  ;;  %1708 = vmatpush3.bf16.msra.mxu0 %v2141_v43 }
 0x192   :  { %1710 = vmatprep.subr.bf16.mxu0 %v2169_v55 }
 0x194   :  { %v955_v28 = vld [vmem:[#allocation3 + $0x20] sm:$0xff] }
 0x195   :  { %v2494_v51 = vadd.f32 %v955_v28, %v953_v14  ;;  %1712 = vmatpush3.bf16.msra.mxu0 %v2169_v55  ;;  %v1137_v28 = vpop.permute.xlu0 %1136 }
 0x196   :  { %1714 = vmatprep.subr.bf16.mxu0 %v2174_v58 }
 0x197   :  { %959 = vst [vmem:[#allocation3 + $0x20] sm:$0xff] %v2494_v51  ;;  %1598 = vmatprep.mubr.f32.mxu0 %v2494_v51 }
 0x199   :  { %1716 = vmatpush3.bf16.msra.mxu0 %v2174_v58 }
 0x19a   :  { %1718 = vmatprep.subr.bf16.mxu0 %v2178_v61 }
 0x19d   :  { %1720 = vmatpush3.bf16.msra.mxu0 %v2178_v61 }
 0x19e   :  { %1722 = vmatprep.subr.bf16.mxu0 %v2182_v0 }
 0x1a1   :  { %1724 = vmatpush3.bf16.msra.mxu0 %v2182_v0 }
 0x1a2   :  { %1726 = vmatprep.subr.bf16.mxu0 %v2186_v3 }
 0x1a5   :  { %1728 = vmatpush3.bf16.msra.mxu0 %v2186_v3 }
 0x1a8   :  { %1599 = vmatmul.mubr.f32.vlgmr.msra.gmra.mrb[6].mxu0 %v2458_v34 }
 0x229   :  { %v1495_v31 = vpop.f32.mrb[0].mxu1 }
 0x22a   :  { %v504_v37 = vpop.f32.mrb[1].mxu1 }
 0x25b   :  { %v1530_v43 = vpop.f32.mrb[4].mxu0 }
 0x25c   :  { %v690_v55 = vadd.f32 %v1530_v43, %v1495_v31  ;;  %v680_v33 = vpop.f32.mrb[5].mxu0 }
 0x25d   :  { %v689_v58 = vadd.f32 %v680_v33, %v504_v37 }
 0x25e   :  { %v1070_v1 = vmul.f32 0.2, %v690_v55  ;;  %vm1064_vm1 = vcmp.ge.f32.partialorder %v690_v55, 0.0 }
 0x25f   :  { %v1069_v5 = vmul.f32 0.2, %v689_v58  ;;  %vm1063_vm2 = vcmp.ge.f32.partialorder %v689_v58, 0.0 }
 0x260   :  { %v1076_v20 = vsel %vm1064_vm1, %v690_v55, %v1070_v1 }
 0x261   :  { %v1075_v11 = vsel %vm1063_vm2, %v689_v58, %v1069_v5 }
 0x264   :  { %v1565_v59 = vpop.f32.mrb[2].mxu1 }
 0x265   :  { %v871_v60 = vadd.f32 %v1565_v59, %v1495_v31  ;;  %v861_v62 = vpop.f32.mrb[3].mxu1 }
 0x266   :  { %v870_v61 = vadd.f32 %v861_v62, %v504_v37 }
 0x267   :  { %v1072_v3 = vmul.f32 0.2, %v871_v60  ;;  %vm1066_vm4 = vcmp.ge.f32.partialorder %v871_v60, 0.0 }
 0x268   :  { %v1071_v8 = vmul.f32 0.2, %v870_v61  ;;  %vm1065_vm6 = vcmp.ge.f32.partialorder %v870_v61, 0.0 }
 0x269   :  { %v1078_v16 = vsel %vm1066_vm4, %v871_v60, %v1072_v3 }
 0x26a   :  { %v1077_v19 = vsel %vm1065_vm6, %v870_v61, %v1071_v8 }
 0x27b   :  { %v1600_v63 = vpop.f32.mrb[6].mxu0 }
 0x27c   :  { %v1053_v2 = vadd.f32 %v1600_v63, %v1495_v31  ;;  %v1043_v0 = vpop.f32.mrb[7].mxu0 }
 0x27d   :  { %v1052_v6 = vadd.f32 %v1043_v0, %v504_v37 }
 0x27e   :  { %vm1068_vm3 = vcmp.ge.f32.partialorder %v1053_v2, 0.0  ;;  %v1074_v7 = vmul.f32 0.2, %v1053_v2 }
 0x27f   :  { %vm1067_vm5 = vcmp.ge.f32.partialorder %v1052_v6, 0.0  ;;  %v1073_v9 = vmul.f32 0.2, %v1052_v6 }
 0x280   :  { %v1080_v10 = vsel %vm1068_vm3, %v1053_v2, %v1074_v7 }
 0x281   :  { %v1083_v12 = vmax.f32 %v1076_v20, %v1080_v10  ;;  %v1079_v49 = vsel %vm1067_vm5, %v1052_v6, %v1073_v9 }
 0x282   :  { %v1081_v18 = vmax.f32 %v1075_v11, %v1079_v49 }
 0x283   :  { %v1084_v42 = vmax.f32 %v1083_v12, %v1078_v16 }
 0x284   :  { %v1082_v17 = vmax.f32 %v1081_v18, %v1077_v19 }
 0x285   :  { %v1090_v41 = vsub.f32 %v1080_v10, %v1084_v42  ;;  %v1086_v24 = vsub.f32 %v1076_v20, %v1084_v42  ;;  %v1088_v26 = vsub.f32 %v1078_v16, %v1084_v42 }
 0x286   :  { %v1089_v27 = vsub.f32 %v1079_v49, %v1082_v17  ;;  %v1085_v29 = vsub.f32 %v1075_v11, %v1082_v17  ;;  %v1087_v30 = vsub.f32 %v1077_v19, %v1082_v17 }
 0x287   :  { %v1101_v25 = vmul.f32 1.442695, %v1090_v41  ;;  %v1093_v32 = vmul.f32 1.442695, %v1086_v24  ;;  %v1097_v38 = vmul.f32 1.442695, %v1088_v26 }
 0x288   :  { %v1099_v13 = vmul.f32 1.442695, %v1089_v27  ;;  %v1091_v35 = vmul.f32 1.442695, %v1085_v29  ;;  %v1095_v36 = vmul.f32 1.442695, %v1087_v30 }
 0x289   :  { %1775 = vpow2.f32 %v1101_v25 }
 0x28a   :  { %1777 = vpow2.f32 %v1099_v13 }
 0x28b   :  { %1779 = vpow2.f32 %v1093_v32 }
 0x28c   :  { %1781 = vpow2.f32 %v1091_v35 }
 0x28d   :  { %1783 = vpow2.f32 %v1095_v36 }
 0x28e   :  { %1785 = vpow2.f32 %v1097_v38 }
 0x293   :  { %v1776_v22 = vpop.eup %1775 }
 0x294   :  { %v1778_v23 = vpop.eup %1777  ;;  %v1144_v55 = vmul.f32 %v1776_v22, %v1137_v28 }
 0x295   :  { %v1780_v48 = vpop.eup %1779  ;;  %v1143_v14 = vmul.f32 %v1778_v23, %v1132_v52 }
 0x296   :  { %v1782_v45 = vpop.eup %1781  ;;  %v1140_v46 = vmul.f32 %v1780_v48, %v1117_v39  ;;  %v1166_v0 = vmul.f32 %v1144_v55, %v2458_v34  ;;  %v1355_v34 = vld [vmem:[%s2600_s12] ss:$0 sm:$0xff] }
 0x297   :  { %v1784_v47 = vpop.eup %1783  ;;  %v1139_v21 = vmul.f32 %v1782_v45, %v1112_v4  ;;  %v1165_v63 = vmul.f32 %v1143_v14, %v2494_v51 }
 0x298   :  { %v1786_v53 = vpop.eup %1785  ;;  %v1141_v56 = vmul.f32 %v1784_v47, %v1122_v40  ;;  %v1162_v31 = vmul.f32 %v1140_v46, %v2444_v15 }
 0x299   :  { %v1161_v37 = vmul.f32 %v1139_v21, %v2481_v54  ;;  %v1142_v43 = vmul.f32 %v1786_v53, %v1127_v50 }
 0x29a   :  { %v1145_v33 = vadd.f32 %v1141_v56, %v1139_v21  ;;  %v1163_v58 = vmul.f32 %v1141_v56, %v2486_v57 }
 0x29b   :  { %v1147_v59 = vadd.f32 %v1142_v43, %v1140_v46  ;;  %v1164_v60 = vmul.f32 %v1142_v43, %v2472_v44 }
 0x29c   :  { %v1167_v62 = vadd.f32 %v1163_v58, %v1161_v37  ;;  %v1146_v61 = vadd.f32 %v1145_v33, %v1143_v14 }
 0x29d   :  { %v1169_v1 = vadd.f32 %v1164_v60, %v1162_v31  ;;  %v1148_v2 = vadd.f32 %v1147_v59, %v1144_v55 }
 0x29e   :  { %vm1149_vm7 = vcmp.gt.f32.partialorder %v1146_v61, 0.0  ;;  %v1168_v15 = vadd.f32 %v1167_v62, %v1165_v63 }
 0x29f   :  { %v1151_v5 = vsel %vm1149_vm7, %v1146_v61, 1.0  ;;  %vm1150_vm8 = vcmp.gt.f32.partialorder %v1148_v2, 0.0  ;;  %v1170_v54 = vadd.f32 %v1169_v1, %v1166_v0 }
 0x2a0   :  { %1787 = vrcp.f32 %v1151_v5  ;;  %v1152_v6 = vsel %vm1150_vm8, %v1148_v2, 1.0 }
 0x2a1   :  { %1789 = vrcp.f32 %v1152_v6 }
 0x2aa   :  { %v1788_v57 = vpop.eup %1787 }
 0x2ab   :  { %v1790_v3 = vpop.eup %1789  ;;  %v1171_v7 = vmul.f32 %v1788_v57, %v1168_v15 }
 0x2ac   :  { %v1172_v44 = vmul.f32 %v1790_v3, %v1170_v54 }
 0x2ad   :  { %1175 = vrot.lane.b32.xlu1 %v1171_v7, %s1938_s10 }
 0x2ae   :  { %1177 = vrot.lane.b32.xlu0 %v1172_v44, %s1938_s10 }
 0x31f   :  { %v1176_v51 = vpop.permute.xlu1 %1175 }
 0x320   :  { %v1178_v8 = vpop.permute.xlu0 %1177  ;;  %v1181_v9 = vadd.f32 %v1176_v51, %v1171_v7 }
 0x321   :  { %v1182_v20 = vadd.f32 %v1178_v8, %v1172_v44 }
 0x322   :  { %v1183_v10 = vmul.f32 0.5, %v1181_v9 }
 0x323   :  { %v1184_v11 = vmul.f32 0.5, %v1182_v20 }
 0x324   :  { %v1192_v12 = vadd.f32 %v1355_v34, %v1183_v10 }
 0x325   :  { %v1193_v49 = vadd.f32 %v1355_v34, %v1184_v11 }
 0x326   :  { %v1194_v16 = vadd.f32 1e-06, %v1192_v12 }
 0x327   :  { %v1195_v18 = vadd.f32 1e-06, %v1193_v49 }
 0x328   :  { %v1196_v19 = vmax.f32 %v1194_v16, 0.0 }
 0x329   :  { %v1197_v42 = vmax.f32 %v1195_v18, 0.0 }
 0x32a   :  { %v1358_v17 = vpack.c.bf16 %v1196_v19, %v1196_v19 }
 0x32b   :  { %v1359_v41 = vpack.c.bf16 %v1197_v42, %v1197_v42 }
 0x32c   :  { %1209 = vst.msk [vmem:[#allocation15] sm:$0xf] %vm1208_vm9, %v1358_v17 }
 0x32d   :  { %1210 = vst.msk [vmem:[#allocation15 + $0x4] sm:$0xf] %vm1208_vm9, %v1359_v41 }
 0x32e   :  { %1902 = shalt.err (!%p1899_p13)
}
 0x32f   :  { %s2601_s2 = sld [smem:[#allocation45_spill]] }
 0x335   :  { %s1903_s22 = scalar_lea.hbm %s2601_s2, 128 }
 0x336   :  { %p1904_p0 = scmp.ne.s32.totalorder %s2601_s2, %s1903_s22  ;;  %p1907_p1 = scmp.lt.u32.totalorder %s1903_s22, %s2601_s2 }
 0x338   :  { %p1909_p2 = pnand %p1907_p1, %p1904_p0 }
 0x33a   :  { %1912 = shalt.err (!%p1909_p2)
}
 0x33b   :  { %s2602_s6 = smov 4   ;;  %s2603_s30 = smov 64  }
 0x33c   :  { %1222 = dma.vmem_to_hbm [thread:$0]  %s1217_s29, 128, %s2601_s2, [#allocation7], %s2603_s30, %s2603_s30, %s2602_s6  }
 0x33d   :  { %1921 = dma.done.wait [#allocation7], 128  }
 0x33e   :  { %1922 = vsyncadd [#allocation7], 4294967168 }
 0x33f   :  { %1226 = vsyncpa [#allocation6], 1 }
 0x340   :  { %1227 = vsyncpa [#allocation11], 1 }
 0x341   :  { %1228 = vsyncpa [#allocation14], 1 }
 0x342   :  { %1229 = vsyncpa [#allocation7], 1 }
 0x343   :  { %1230 = vsyncpa [#allocation8], 1 }

</bundles_post_ra>
